<compile_context>
chip_gen: v7x
topology: tpu7x:2x2x1
jax: 0.10.0
libtpu: 0.0.40
codegen_flags: <defaults>
</compile_context>

<pallas_src>
import math
import functools

import jax
import jax.numpy as jnp
from jax.experimental import pallas as pl
from jax.experimental.pallas import tpu as pltpu


# ----------------------------- kernel ---------------------------------------


def _layernorm(x, gamma, beta, eps=1e-5):
    mu = jnp.mean(x, axis=-1, keepdims=True)
    var = jnp.mean((x - mu) ** 2, axis=-1, keepdims=True)
    return (x - mu) * jax.lax.rsqrt(var + eps) * gamma + beta


def transformer_fused_kernel(x_ref,
                             wqkv_ref, bqkv_ref, wo_ref, bo_ref,
                             g1_ref, be1_ref,
                             w1_ref, b1_ref, w2_ref, b2_ref,
                             g2_ref, be2_ref,
                             wout_ref, bout_ref,
                             o_ref, *,
                             num_layers, num_heads, d_k, batch, seq):
    """Full Transformer forward: L fused blocks + final (padded) vocab proj."""
    B, S = batch, seq
    D = num_heads * d_k
    scale = 1.0 / math.sqrt(d_k)

    x = x_ref[...].reshape(B * S, D)          # all tokens in one (B*S, D) slab

    for l in range(num_layers):               # static unrolled layer loop
        # ---- fused QKV projection: one (B*S, D) @ (D, 3D) MXU op ----
        qkv = (jnp.dot(x, wqkv_ref[l], preferred_element_type=jnp.float32)
               + bqkv_ref[l])                 # (B*S, 3D)
        q = qkv[:, 0 * D:1 * D].reshape(B, S, D)
        k = qkv[:, 1 * D:2 * D].reshape(B, S, D)
        v = qkv[:, 2 * D:3 * D].reshape(B, S, D)

        # ---- multi-head attention, batched over B via 3-D einsum ----
        head_outs = []
        for h in range(num_heads):            # static unrolled head loop (H=4)
            sl = slice(h * d_k, (h + 1) * d_k)
            qh, kh, vh = q[:, :, sl], k[:, :, sl], v[:, :, sl]   # (B, S, d_k)
            s = jnp.einsum('bqd,bkd->bqk', qh, kh,
                           preferred_element_type=jnp.float32) * scale
            s = s - jnp.max(s, axis=-1, keepdims=True)
            p = jnp.exp(s)
            p = p * pl.reciprocal(jnp.sum(p, axis=-1, keepdims=True),
                                  approx=True)
            head_outs.append(jnp.einsum('bqk,bkd->bqd', p, vh,
                                        preferred_element_type=jnp.float32))
        attn = jnp.concatenate(head_outs, axis=-1).reshape(B * S, D)
        attn = (jnp.dot(attn, wo_ref[l], preferred_element_type=jnp.float32)
                + bo_ref[l])

        # ---- residual + LayerNorm 1 (dropout == identity) ----
        x1 = _layernorm(x + attn, g1_ref[l], be1_ref[l])

        # ---- FeedForward ----
        h1 = (jnp.dot(x1, w1_ref[l], preferred_element_type=jnp.float32)
              + b1_ref[l])
        h1 = jnp.maximum(h1, 0.0)
        ffn = (jnp.dot(h1, w2_ref[l], preferred_element_type=jnp.float32)
               + b2_ref[l])

        # ---- residual + LayerNorm 2 ----
        x = _layernorm(x1 + ffn, g2_ref[l], be2_ref[l])

    # ---- final vocab projection, lane-dense (V padded to 128) ----
    o_ref[...] = (jnp.dot(x, wout_ref[...], preferred_element_type=jnp.float32)
                  + bout_ref[...])


# ----------------------------- wrapper ---------------------------------------


def transformer_forward(token_ids, params, num_heads):
    # plain-JAX glue: embedding gather + positional encoding add
    S = token_ids.shape[1]
    x = params["embedding"][token_ids] + params["pe"][:S][None, :, :]
    B, _, D = x.shape
    L = params["wqkv"].shape[0]
    d_k = D // num_heads
    V = params["w_out"].shape[1]
    Vpad = ((V + 127) // 128) * 128           # lane-dense output width

    w_out_p = jnp.zeros((D, Vpad), jnp.float32).at[:, :V].set(params["w_out"])
    b_out_p = jnp.zeros((1, Vpad), jnp.float32).at[:, :V].set(params["b_out"])

    kernel = functools.partial(transformer_fused_kernel,
                               num_layers=L, num_heads=num_heads,
                               d_k=d_k, batch=B, seq=S)

    # Single fused call: no grid, everything mapped fully into VMEM.
    logits_padded = pl.pallas_call(
        kernel,
        out_shape=jax.ShapeDtypeStruct((B * S, Vpad), jnp.float32),
        compiler_params=pltpu.CompilerParams(
            vmem_limit_bytes=32 * 1024 * 1024),   # stay within v7x scoped VMEM
    )(x,
      params["wqkv"], params["bqkv"], params["wo"], params["bo"],
      params["g1"], params["be1"],
      params["w1"], params["b1"], params["w2"], params["b2"],
      params["g2"], params["be2"],
      w_out_p, b_out_p)

    return logits_padded[:, :V].reshape(B, S, V)


# ----------------------------- params ----------------------------------------


def init_params(key, vocab_size, d_model, num_heads, d_ff, num_layers, max_len):
    def lin(k, shape, scale=0.02):
        return jax.random.normal(k, shape, jnp.float32) * scale

    k_emb, k_layers, k_out = jax.random.split(key, 3)
    params = {}
    params["embedding"] = lin(k_emb, (vocab_size, d_model))

    # sinusoidal positional encoding (same formula as PositionalEncoding)
    position = jnp.arange(max_len, dtype=jnp.float32)[:, None]
    div_term = jnp.exp(jnp.arange(0, d_model, 2, dtype=jnp.float32)
                       * (-math.log(10000.0) / d_model))
    pe = jnp.zeros((max_len, d_model), jnp.float32)
    pe = pe.at[:, 0::2].set(jnp.sin(position * div_term))
    pe = pe.at[:, 1::2].set(jnp.cos(position * div_term))
    params["pe"] = pe

    lkeys = jax.random.split(k_layers, num_layers)
    wqkv, bqkv, wo, bo, w1, b1, w2, b2 = ([] for _ in range(8))
    for l in range(num_layers):
        k = jax.random.split(lkeys[l], 8)
        wqkv.append(lin(k[0], (d_model, 3 * d_model)))
        bqkv.append(lin(k[1], (1, 3 * d_model), 0.01))
        wo.append(lin(k[2], (d_model, d_model)))
        bo.append(lin(k[3], (1, d_model), 0.01))
        w1.append(lin(k[4], (d_model, d_ff)))
        b1.append(lin(k[5], (1, d_ff), 0.01))
        w2.append(lin(k[6], (d_ff, d_model)))
        b2.append(lin(k[7], (1, d_model), 0.01))

    params["wqkv"] = jnp.stack(wqkv)
    params["bqkv"] = jnp.stack(bqkv)
    params["wo"] = jnp.stack(wo)
    params["bo"] = jnp.stack(bo)
    params["w1"] = jnp.stack(w1)
    params["b1"] = jnp.stack(b1)
    params["w2"] = jnp.stack(w2)
    params["b2"] = jnp.stack(b2)
    params["g1"] = jnp.ones((num_layers, 1, d_model), jnp.float32)
    params["be1"] = jnp.zeros((num_layers, 1, d_model), jnp.float32)
    params["g2"] = jnp.ones((num_layers, 1, d_model), jnp.float32)
    params["be2"] = jnp.zeros((num_layers, 1, d_model), jnp.float32)

    ok = jax.random.split(k_out, 2)
    params["w_out"] = lin(ok[0], (d_model, vocab_size))
    params["b_out"] = lin(ok[1], (1, vocab_size), 0.01)
    return params


# ----------------------------- reference --------------------------------------


def reference_forward(token_ids, params, num_heads):
    S = token_ids.shape[1]
    x = params["embedding"][token_ids] + params["pe"][:S][None, :, :]
    B, _, D = x.shape
    d_k = D // num_heads
    L = params["wqkv"].shape[0]

    def ln(y, g, b, eps=1e-5):
        mu = jnp.mean(y, axis=-1, keepdims=True)
        var = jnp.mean((y - mu) ** 2, axis=-1, keepdims=True)
        return (y - mu) * jax.lax.rsqrt(var + eps) * g + b

    for l in range(L):
        qkv = x @ params["wqkv"][l] + params["bqkv"][l]
        q, k, v = jnp.split(qkv, 3, axis=-1)
        q = q.reshape(B, S, num_heads, d_k).transpose(0, 2, 1, 3)
        k = k.reshape(B, S, num_heads, d_k).transpose(0, 2, 1, 3)
        v = v.reshape(B, S, num_heads, d_k).transpose(0, 2, 1, 3)
        scores = jnp.einsum("bhqd,bhkd->bhqk", q, k) / math.sqrt(d_k)
        p = jax.nn.softmax(scores, axis=-1)
        o = jnp.einsum("bhqk,bhkd->bhqd", p, v).transpose(0, 2, 1, 3)
        attn = o.reshape(B, S, D) @ params["wo"][l] + params["bo"][l]
        x1 = ln(x + attn, params["g1"][l], params["be1"][l])
        ffn = (jnp.maximum(x1 @ params["w1"][l] + params["b1"][l], 0.0)
               @ params["w2"][l] + params["b2"][l])
        x = ln(x1 + ffn, params["g2"][l], params["be2"][l])
    return x @ params["w_out"] + params["b_out"]


# ----------------------------- main -------------------------------------------


if __name__ == "__main__":
    VOCAB = 64
    D_MODEL = 32
    NUM_HEADS = 4
    D_FF = 64
    NUM_LAYERS = 2
    MAX_LEN = 16
    BATCH = 2
    SEQ = 8

    root = jax.random.PRNGKey(0)
    pkey, xkey = jax.random.split(root)
    params = init_params(pkey, VOCAB, D_MODEL, NUM_HEADS, D_FF, NUM_LAYERS, MAX_LEN)
    token_ids = jax.random.randint(xkey, (BATCH, SEQ), 0, VOCAB, dtype=jnp.int32)

    logits = transformer_forward(token_ids, params, NUM_HEADS)
    logits = jax.block_until_ready(logits)

    ref = reference_forward(token_ids, params, NUM_HEADS)
    assert logits.shape == (BATCH, SEQ, VOCAB), logits.shape
    if not jnp.allclose(logits, ref, rtol=1e-2, atol=1e-3):
        raise AssertionError("Pallas output does not match JAX reference")

    print("KERNEL_OK")
</pallas_src>

<mosaic_0001>
module attributes {stable_mosaic.version = 11 : i64} {
  func.func @transformer_fused_kernel(%arg0: memref<2x8x32xf32, #tpu.memory_space<vmem>>, %arg1: memref<2x32x96xf32, #tpu.memory_space<vmem>>, %arg2: memref<2x1x96xf32, #tpu.memory_space<vmem>>, %arg3: memref<2x32x32xf32, #tpu.memory_space<vmem>>, %arg4: memref<2x1x32xf32, #tpu.memory_space<vmem>>, %arg5: memref<2x1x32xf32, #tpu.memory_space<vmem>>, %arg6: memref<2x1x32xf32, #tpu.memory_space<vmem>>, %arg7: memref<2x32x64xf32, #tpu.memory_space<vmem>>, %arg8: memref<2x1x64xf32, #tpu.memory_space<vmem>>, %arg9: memref<2x64x32xf32, #tpu.memory_space<vmem>>, %arg10: memref<2x1x32xf32, #tpu.memory_space<vmem>>, %arg11: memref<2x1x32xf32, #tpu.memory_space<vmem>>, %arg12: memref<2x1x32xf32, #tpu.memory_space<vmem>>, %arg13: memref<32x128xf32, #tpu.memory_space<vmem>>, %arg14: memref<1x128xf32, #tpu.memory_space<vmem>>, %arg15: memref<16x128xf32, #tpu.memory_space<vmem>>) attributes {dimension_semantics = [], scalar_prefetch = 0 : i64, scratch_operands = 0 : i64, tpu.core_type = #tpu.core_type<tc>} {
    %c0 = arith.constant 0 : index
    %c0_0 = arith.constant 0 : index
    %c0_1 = arith.constant 0 : index
    %0 = vector.load %arg0[%c0, %c0_0, %c0_1] : memref<2x8x32xf32, #tpu.memory_space<vmem>>, vector<2x8x32xf32>
    %1 = vector.shape_cast %0 : vector<2x8x32xf32> to vector<16x32xf32>
    %c0_2 = arith.constant 0 : index
    %c0_3 = arith.constant 0 : index
    %c0_4 = arith.constant 0 : index
    %2 = vector.load %arg1[%c0_2, %c0_3, %c0_4] : memref<2x32x96xf32, #tpu.memory_space<vmem>>, vector<1x32x96xf32>
    %3 = vector.shape_cast %2 : vector<1x32x96xf32> to vector<32x96xf32>
    %cst = arith.constant dense<0.000000e+00> : vector<16x96xf32>
    %4 = tpu.matmul %1, %3, %cst {dimension_numbers = #tpu.dot_dimension_numbers<[1], [0], [0], [1], [0, 0, 1, 1], [], []>} : vector<16x32xf32>, vector<32x96xf32>, vector<16x96xf32> -> vector<16x96xf32>
    %c0_5 = arith.constant 0 : index
    %c0_6 = arith.constant 0 : index
    %c0_7 = arith.constant 0 : index
    %5 = vector.load %arg2[%c0_5, %c0_6, %c0_7] : memref<2x1x96xf32, #tpu.memory_space<vmem>>, vector<1x1x96xf32>
    %6 = vector.shape_cast %5 : vector<1x1x96xf32> to vector<1x96xf32>
    %7 = vector.broadcast %6 : vector<1x96xf32> to vector<16x96xf32>
    %8 = arith.addf %4, %7 : vector<16x96xf32>
    %9 = vector.extract_strided_slice %8 {offsets = [0, 0], sizes = [16, 32], strides = [1, 1]} : vector<16x96xf32> to vector<16x32xf32>
    %10 = vector.shape_cast %9 : vector<16x32xf32> to vector<2x8x32xf32>
    %11 = vector.extract_strided_slice %8 {offsets = [0, 32], sizes = [16, 32], strides = [1, 1]} : vector<16x96xf32> to vector<16x32xf32>
    %12 = vector.shape_cast %11 : vector<16x32xf32> to vector<2x8x32xf32>
    %13 = vector.extract_strided_slice %8 {offsets = [0, 64], sizes = [16, 32], strides = [1, 1]} : vector<16x96xf32> to vector<16x32xf32>
    %14 = vector.shape_cast %13 : vector<16x32xf32> to vector<2x8x32xf32>
    %15 = vector.extract_strided_slice %10 {offsets = [0, 0, 0], sizes = [2, 8, 8], strides = [1, 1, 1]} : vector<2x8x32xf32> to vector<2x8x8xf32>
    %16 = vector.extract_strided_slice %12 {offsets = [0, 0, 0], sizes = [2, 8, 8], strides = [1, 1, 1]} : vector<2x8x32xf32> to vector<2x8x8xf32>
    %17 = vector.extract_strided_slice %14 {offsets = [0, 0, 0], sizes = [2, 8, 8], strides = [1, 1, 1]} : vector<2x8x32xf32> to vector<2x8x8xf32>
    "tpu.trace_start"() <{level = 10 : i32, message = "bqd,bkd->bqk"}> : () -> ()
    %cst_8 = arith.constant dense<0.000000e+00> : vector<2x8x8xf32>
    %18 = tpu.matmul %15, %16, %cst_8 {dimension_numbers = #tpu.dot_dimension_numbers<[2], [2], [1], [1], [0, 0, 0, 1, 1, 1], [0], [0]>} : vector<2x8x8xf32>, vector<2x8x8xf32>, vector<2x8x8xf32> -> vector<2x8x8xf32>
    "tpu.trace_stop"() : () -> ()
    %cst_9 = arith.constant 0.353553385 : f32
    %19 = vector.broadcast %cst_9 : f32 to vector<2x8x8xf32>
    %20 = arith.mulf %18, %19 : vector<2x8x8xf32>
    %cst_10 = arith.constant dense<0xFF800000> : vector<2x8xf32>
    %21 = vector.multi_reduction <maximumf>, %20, %cst_10 [2] : vector<2x8x8xf32> to vector<2x8xf32>
    %22 = vector.shape_cast %21 : vector<2x8xf32> to vector<2x8x1xf32>
    %23 = vector.broadcast %22 : vector<2x8x1xf32> to vector<2x8x8xf32>
    %24 = arith.subf %20, %23 : vector<2x8x8xf32>
    %25 = math.exp %24 : vector<2x8x8xf32>
    %cst_11 = arith.constant dense<0.000000e+00> : vector<2x8xf32>
    %26 = vector.multi_reduction <add>, %25, %cst_11 [2] : vector<2x8x8xf32> to vector<2x8xf32>
    %27 = vector.shape_cast %26 : vector<2x8xf32> to vector<2x8x1xf32>
    %28 = tpu.reciprocal %27 {approx = true} : vector<2x8x1xf32> -> vector<2x8x1xf32>
    %29 = vector.broadcast %28 : vector<2x8x1xf32> to vector<2x8x8xf32>
    %30 = arith.mulf %25, %29 : vector<2x8x8xf32>
    "tpu.trace_start"() <{level = 10 : i32, message = "bqk,bkd->bqd"}> : () -> ()
    %cst_12 = arith.constant dense<0.000000e+00> : vector<2x8x8xf32>
    %31 = tpu.matmul %30, %17, %cst_12 {dimension_numbers = #tpu.dot_dimension_numbers<[2], [1], [1], [2], [0, 0, 0, 1, 1, 2], [0], [0]>} : vector<2x8x8xf32>, vector<2x8x8xf32>, vector<2x8x8xf32> -> vector<2x8x8xf32>
    "tpu.trace_stop"() : () -> ()
    %32 = vector.extract_strided_slice %10 {offsets = [0, 0, 8], sizes = [2, 8, 8], strides = [1, 1, 1]} : vector<2x8x32xf32> to vector<2x8x8xf32>
    %33 = vector.extract_strided_slice %12 {offsets = [0, 0, 8], sizes = [2, 8, 8], strides = [1, 1, 1]} : vector<2x8x32xf32> to vector<2x8x8xf32>
    %34 = vector.extract_strided_slice %14 {offsets = [0, 0, 8], sizes = [2, 8, 8], strides = [1, 1, 1]} : vector<2x8x32xf32> to vector<2x8x8xf32>
    "tpu.trace_start"() <{level = 10 : i32, message = "bqd,bkd->bqk"}> : () -> ()
    %cst_13 = arith.constant dense<0.000000e+00> : vector<2x8x8xf32>
    %35 = tpu.matmul %32, %33, %cst_13 {dimension_numbers = #tpu.dot_dimension_numbers<[2], [2], [1], [1], [0, 0, 0, 1, 1, 1], [0], [0]>} : vector<2x8x8xf32>, vector<2x8x8xf32>, vector<2x8x8xf32> -> vector<2x8x8xf32>
    "tpu.trace_stop"() : () -> ()
    %cst_14 = arith.constant 0.353553385 : f32
    %36 = vector.broadcast %cst_14 : f32 to vector<2x8x8xf32>
    %37 = arith.mulf %35, %36 : vector<2x8x8xf32>
    %cst_15 = arith.constant dense<0xFF800000> : vector<2x8xf32>
    %38 = vector.multi_reduction <maximumf>, %37, %cst_15 [2] : vector<2x8x8xf32> to vector<2x8xf32>
    %39 = vector.shape_cast %38 : vector<2x8xf32> to vector<2x8x1xf32>
    %40 = vector.broadcast %39 : vector<2x8x1xf32> to vector<2x8x8xf32>
    %41 = arith.subf %37, %40 : vector<2x8x8xf32>
    %42 = math.exp %41 : vector<2x8x8xf32>
    %cst_16 = arith.constant dense<0.000000e+00> : vector<2x8xf32>
    %43 = vector.multi_reduction <add>, %42, %cst_16 [2] : vector<2x8x8xf32> to vector<2x8xf32>
    %44 = vector.shape_cast %43 : vector<2x8xf32> to vector<2x8x1xf32>
    %45 = tpu.reciprocal %44 {approx = true} : vector<2x8x1xf32> -> vector<2x8x1xf32>
    %46 = vector.broadcast %45 : vector<2x8x1xf32> to vector<2x8x8xf32>
    %47 = arith.mulf %42, %46 : vector<2x8x8xf32>
    "tpu.trace_start"() <{level = 10 : i32, message = "bqk,bkd->bqd"}> : () -> ()
    %cst_17 = arith.constant dense<0.000000e+00> : vector<2x8x8xf32>
    %48 = tpu.matmul %47, %34, %cst_17 {dimension_numbers = #tpu.dot_dimension_numbers<[2], [1], [1], [2], [0, 0, 0, 1, 1, 2], [0], [0]>} : vector<2x8x8xf32>, vector<2x8x8xf32>, vector<2x8x8xf32> -> vector<2x8x8xf32>
    "tpu.trace_stop"() : () -> ()
    %49 = vector.extract_strided_slice %10 {offsets = [0, 0, 16], sizes = [2, 8, 8], strides = [1, 1, 1]} : vector<2x8x32xf32> to vector<2x8x8xf32>
    %50 = vector.extract_strided_slice %12 {offsets = [0, 0, 16], sizes = [2, 8, 8], strides = [1, 1, 1]} : vector<2x8x32xf32> to vector<2x8x8xf32>
    %51 = vector.extract_strided_slice %14 {offsets = [0, 0, 16], sizes = [2, 8, 8], strides = [1, 1, 1]} : vector<2x8x32xf32> to vector<2x8x8xf32>
    "tpu.trace_start"() <{level = 10 : i32, message = "bqd,bkd->bqk"}> : () -> ()
    %cst_18 = arith.constant dense<0.000000e+00> : vector<2x8x8xf32>
    %52 = tpu.matmul %49, %50, %cst_18 {dimension_numbers = #tpu.dot_dimension_numbers<[2], [2], [1], [1], [0, 0, 0, 1, 1, 1], [0], [0]>} : vector<2x8x8xf32>, vector<2x8x8xf32>, vector<2x8x8xf32> -> vector<2x8x8xf32>
    "tpu.trace_stop"() : () -> ()
    %cst_19 = arith.constant 0.353553385 : f32
    %53 = vector.broadcast %cst_19 : f32 to vector<2x8x8xf32>
    %54 = arith.mulf %52, %53 : vector<2x8x8xf32>
    %cst_20 = arith.constant dense<0xFF800000> : vector<2x8xf32>
    %55 = vector.multi_reduction <maximumf>, %54, %cst_20 [2] : vector<2x8x8xf32> to vector<2x8xf32>
    %56 = vector.shape_cast %55 : vector<2x8xf32> to vector<2x8x1xf32>
    %57 = vector.broadcast %56 : vector<2x8x1xf32> to vector<2x8x8xf32>
    %58 = arith.subf %54, %57 : vector<2x8x8xf32>
    %59 = math.exp %58 : vector<2x8x8xf32>
    %cst_21 = arith.constant dense<0.000000e+00> : vector<2x8xf32>
    %60 = vector.multi_reduction <add>, %59, %cst_21 [2] : vector<2x8x8xf32> to vector<2x8xf32>
    %61 = vector.shape_cast %60 : vector<2x8xf32> to vector<2x8x1xf32>
    %62 = tpu.reciprocal %61 {approx = true} : vector<2x8x1xf32> -> vector<2x8x1xf32>
    %63 = vector.broadcast %62 : vector<2x8x1xf32> to vector<2x8x8xf32>
    %64 = arith.mulf %59, %63 : vector<2x8x8xf32>
    "tpu.trace_start"() <{level = 10 : i32, message = "bqk,bkd->bqd"}> : () -> ()
    %cst_22 = arith.constant dense<0.000000e+00> : vector<2x8x8xf32>
    %65 = tpu.matmul %64, %51, %cst_22 {dimension_numbers = #tpu.dot_dimension_numbers<[2], [1], [1], [2], [0, 0, 0, 1, 1, 2], [0], [0]>} : vector<2x8x8xf32>, vector<2x8x8xf32>, vector<2x8x8xf32> -> vector<2x8x8xf32>
    "tpu.trace_stop"() : () -> ()
    %66 = vector.extract_strided_slice %10 {offsets = [0, 0, 24], sizes = [2, 8, 8], strides = [1, 1, 1]} : vector<2x8x32xf32> to vector<2x8x8xf32>
    %67 = vector.extract_strided_slice %12 {offsets = [0, 0, 24], sizes = [2, 8, 8], strides = [1, 1, 1]} : vector<2x8x32xf32> to vector<2x8x8xf32>
    %68 = vector.extract_strided_slice %14 {offsets = [0, 0, 24], sizes = [2, 8, 8], strides = [1, 1, 1]} : vector<2x8x32xf32> to vector<2x8x8xf32>
    "tpu.trace_start"() <{level = 10 : i32, message = "bqd,bkd->bqk"}> : () -> ()
    %cst_23 = arith.constant dense<0.000000e+00> : vector<2x8x8xf32>
    %69 = tpu.matmul %66, %67, %cst_23 {dimension_numbers = #tpu.dot_dimension_numbers<[2], [2], [1], [1], [0, 0, 0, 1, 1, 1], [0], [0]>} : vector<2x8x8xf32>, vector<2x8x8xf32>, vector<2x8x8xf32> -> vector<2x8x8xf32>
    "tpu.trace_stop"() : () -> ()
    %cst_24 = arith.constant 0.353553385 : f32
    %70 = vector.broadcast %cst_24 : f32 to vector<2x8x8xf32>
    %71 = arith.mulf %69, %70 : vector<2x8x8xf32>
    %cst_25 = arith.constant dense<0xFF800000> : vector<2x8xf32>
    %72 = vector.multi_reduction <maximumf>, %71, %cst_25 [2] : vector<2x8x8xf32> to vector<2x8xf32>
    %73 = vector.shape_cast %72 : vector<2x8xf32> to vector<2x8x1xf32>
    %74 = vector.broadcast %73 : vector<2x8x1xf32> to vector<2x8x8xf32>
    %75 = arith.subf %71, %74 : vector<2x8x8xf32>
    %76 = math.exp %75 : vector<2x8x8xf32>
    %cst_26 = arith.constant dense<0.000000e+00> : vector<2x8xf32>
    %77 = vector.multi_reduction <add>, %76, %cst_26 [2] : vector<2x8x8xf32> to vector<2x8xf32>
    %78 = vector.shape_cast %77 : vector<2x8xf32> to vector<2x8x1xf32>
    %79 = tpu.reciprocal %78 {approx = true} : vector<2x8x1xf32> -> vector<2x8x1xf32>
    %80 = vector.broadcast %79 : vector<2x8x1xf32> to vector<2x8x8xf32>
    %81 = arith.mulf %76, %80 : vector<2x8x8xf32>
    "tpu.trace_start"() <{level = 10 : i32, message = "bqk,bkd->bqd"}> : () -> ()
    %cst_27 = arith.constant dense<0.000000e+00> : vector<2x8x8xf32>
    %82 = tpu.matmul %81, %68, %cst_27 {dimension_numbers = #tpu.dot_dimension_numbers<[2], [1], [1], [2], [0, 0, 0, 1, 1, 2], [0], [0]>} : vector<2x8x8xf32>, vector<2x8x8xf32>, vector<2x8x8xf32> -> vector<2x8x8xf32>
    "tpu.trace_stop"() : () -> ()
    %83 = tpu.concatenate %31, %48, %65, %82 in 2 : vector<2x8x8xf32>, vector<2x8x8xf32>, vector<2x8x8xf32>, vector<2x8x8xf32> -> vector<2x8x32xf32>
    %84 = vector.shape_cast %83 : vector<2x8x32xf32> to vector<16x32xf32>
    %c0_28 = arith.constant 0 : index
    %c0_29 = arith.constant 0 : index
    %c0_30 = arith.constant 0 : index
    %85 = vector.load %arg3[%c0_28, %c0_29, %c0_30] : memref<2x32x32xf32, #tpu.memory_space<vmem>>, vector<1x32x32xf32>
    %86 = vector.shape_cast %85 : vector<1x32x32xf32> to vector<32x32xf32>
    %cst_31 = arith.constant dense<0.000000e+00> : vector<16x32xf32>
    %87 = tpu.matmul %84, %86, %cst_31 {dimension_numbers = #tpu.dot_dimension_numbers<[1], [0], [0], [1], [0, 0, 1, 1], [], []>} : vector<16x32xf32>, vector<32x32xf32>, vector<16x32xf32> -> vector<16x32xf32>
    %c0_32 = arith.constant 0 : index
    %c0_33 = arith.constant 0 : index
    %c0_34 = arith.constant 0 : index
    %88 = vector.load %arg4[%c0_32, %c0_33, %c0_34] : memref<2x1x32xf32, #tpu.memory_space<vmem>>, vector<1x1x32xf32>
    %89 = vector.shape_cast %88 : vector<1x1x32xf32> to vector<1x32xf32>
    %90 = vector.broadcast %89 : vector<1x32xf32> to vector<16x32xf32>
    %91 = arith.addf %87, %90 : vector<16x32xf32>
    %92 = arith.addf %1, %91 : vector<16x32xf32>
    %c0_35 = arith.constant 0 : index
    %c0_36 = arith.constant 0 : index
    %c0_37 = arith.constant 0 : index
    %93 = vector.load %arg5[%c0_35, %c0_36, %c0_37] : memref<2x1x32xf32, #tpu.memory_space<vmem>>, vector<1x1x32xf32>
    %94 = vector.shape_cast %93 : vector<1x1x32xf32> to vector<1x32xf32>
    %c0_38 = arith.constant 0 : index
    %c0_39 = arith.constant 0 : index
    %c0_40 = arith.constant 0 : index
    %95 = vector.load %arg6[%c0_38, %c0_39, %c0_40] : memref<2x1x32xf32, #tpu.memory_space<vmem>>, vector<1x1x32xf32>
    %96 = vector.shape_cast %95 : vector<1x1x32xf32> to vector<1x32xf32>
    %cst_41 = arith.constant dense<0.000000e+00> : vector<16xf32>
    %97 = vector.multi_reduction <add>, %92, %cst_41 [1] : vector<16x32xf32> to vector<16xf32>
    %98 = vector.shape_cast %97 : vector<16xf32> to vector<16x1xf32>
    %cst_42 = arith.constant 3.200000e+01 : f32
    %99 = vector.broadcast %cst_42 : f32 to vector<16x1xf32>
    %100 = arith.divf %98, %99 : vector<16x1xf32>
    %101 = vector.broadcast %100 : vector<16x1xf32> to vector<16x32xf32>
    %102 = arith.subf %92, %101 : vector<16x32xf32>
    %103 = arith.mulf %102, %102 : vector<16x32xf32>
    %cst_43 = arith.constant dense<0.000000e+00> : vector<16xf32>
    %104 = vector.multi_reduction <add>, %103, %cst_43 [1] : vector<16x32xf32> to vector<16xf32>
    %105 = vector.shape_cast %104 : vector<16xf32> to vector<16x1xf32>
    %cst_44 = arith.constant 3.200000e+01 : f32
    %106 = vector.broadcast %cst_44 : f32 to vector<16x1xf32>
    %107 = arith.divf %105, %106 : vector<16x1xf32>
    %108 = vector.broadcast %100 : vector<16x1xf32> to vector<16x32xf32>
    %109 = arith.subf %92, %108 : vector<16x32xf32>
    %cst_45 = arith.constant 9.99999974E-6 : f32
    %110 = vector.broadcast %cst_45 : f32 to vector<16x1xf32>
    %111 = arith.addf %107, %110 : vector<16x1xf32>
    %112 = math.rsqrt %111 : vector<16x1xf32>
    %113 = vector.broadcast %112 : vector<16x1xf32> to vector<16x32xf32>
    %114 = arith.mulf %109, %113 : vector<16x32xf32>
    %115 = vector.broadcast %94 : vector<1x32xf32> to vector<16x32xf32>
    %116 = arith.mulf %114, %115 : vector<16x32xf32>
    %117 = vector.broadcast %96 : vector<1x32xf32> to vector<16x32xf32>
    %118 = arith.addf %116, %117 : vector<16x32xf32>
    %c0_46 = arith.constant 0 : index
    %c0_47 = arith.constant 0 : index
    %c0_48 = arith.constant 0 : index
    %119 = vector.load %arg7[%c0_46, %c0_47, %c0_48] : memref<2x32x64xf32, #tpu.memory_space<vmem>>, vector<1x32x64xf32>
    %120 = vector.shape_cast %119 : vector<1x32x64xf32> to vector<32x64xf32>
    %cst_49 = arith.constant dense<0.000000e+00> : vector<16x64xf32>
    %121 = tpu.matmul %118, %120, %cst_49 {dimension_numbers = #tpu.dot_dimension_numbers<[1], [0], [0], [1], [0, 0, 1, 1], [], []>} : vector<16x32xf32>, vector<32x64xf32>, vector<16x64xf32> -> vector<16x64xf32>
    %c0_50 = arith.constant 0 : index
    %c0_51 = arith.constant 0 : index
    %c0_52 = arith.constant 0 : index
    %122 = vector.load %arg8[%c0_50, %c0_51, %c0_52] : memref<2x1x64xf32, #tpu.memory_space<vmem>>, vector<1x1x64xf32>
    %123 = vector.shape_cast %122 : vector<1x1x64xf32> to vector<1x64xf32>
    %124 = vector.broadcast %123 : vector<1x64xf32> to vector<16x64xf32>
    %125 = arith.addf %121, %124 : vector<16x64xf32>
    %cst_53 = arith.constant 0.000000e+00 : f32
    %126 = vector.broadcast %cst_53 : f32 to vector<16x64xf32>
    %127 = arith.maximumf %125, %126 : vector<16x64xf32>
    %c0_54 = arith.constant 0 : index
    %c0_55 = arith.constant 0 : index
    %c0_56 = arith.constant 0 : index
    %128 = vector.load %arg9[%c0_54, %c0_55, %c0_56] : memref<2x64x32xf32, #tpu.memory_space<vmem>>, vector<1x64x32xf32>
    %129 = vector.shape_cast %128 : vector<1x64x32xf32> to vector<64x32xf32>
    %cst_57 = arith.constant dense<0.000000e+00> : vector<16x32xf32>
    %130 = tpu.matmul %127, %129, %cst_57 {dimension_numbers = #tpu.dot_dimension_numbers<[1], [0], [0], [1], [0, 0, 1, 1], [], []>} : vector<16x64xf32>, vector<64x32xf32>, vector<16x32xf32> -> vector<16x32xf32>
    %c0_58 = arith.constant 0 : index
    %c0_59 = arith.constant 0 : index
    %c0_60 = arith.constant 0 : index
    %131 = vector.load %arg10[%c0_58, %c0_59, %c0_60] : memref<2x1x32xf32, #tpu.memory_space<vmem>>, vector<1x1x32xf32>
    %132 = vector.shape_cast %131 : vector<1x1x32xf32> to vector<1x32xf32>
    %133 = vector.broadcast %132 : vector<1x32xf32> to vector<16x32xf32>
    %134 = arith.addf %130, %133 : vector<16x32xf32>
    %135 = arith.addf %118, %134 : vector<16x32xf32>
    %c0_61 = arith.constant 0 : index
    %c0_62 = arith.constant 0 : index
    %c0_63 = arith.constant 0 : index
    %136 = vector.load %arg11[%c0_61, %c0_62, %c0_63] : memref<2x1x32xf32, #tpu.memory_space<vmem>>, vector<1x1x32xf32>
    %137 = vector.shape_cast %136 : vector<1x1x32xf32> to vector<1x32xf32>
    %c0_64 = arith.constant 0 : index
    %c0_65 = arith.constant 0 : index
    %c0_66 = arith.constant 0 : index
    %138 = vector.load %arg12[%c0_64, %c0_65, %c0_66] : memref<2x1x32xf32, #tpu.memory_space<vmem>>, vector<1x1x32xf32>
    %139 = vector.shape_cast %138 : vector<1x1x32xf32> to vector<1x32xf32>
    %cst_67 = arith.constant dense<0.000000e+00> : vector<16xf32>
    %140 = vector.multi_reduction <add>, %135, %cst_67 [1] : vector<16x32xf32> to vector<16xf32>
    %141 = vector.shape_cast %140 : vector<16xf32> to vector<16x1xf32>
    %cst_68 = arith.constant 3.200000e+01 : f32
    %142 = vector.broadcast %cst_68 : f32 to vector<16x1xf32>
    %143 = arith.divf %141, %142 : vector<16x1xf32>
    %144 = vector.broadcast %143 : vector<16x1xf32> to vector<16x32xf32>
    %145 = arith.subf %135, %144 : vector<16x32xf32>
    %146 = arith.mulf %145, %145 : vector<16x32xf32>
    %cst_69 = arith.constant dense<0.000000e+00> : vector<16xf32>
    %147 = vector.multi_reduction <add>, %146, %cst_69 [1] : vector<16x32xf32> to vector<16xf32>
    %148 = vector.shape_cast %147 : vector<16xf32> to vector<16x1xf32>
    %cst_70 = arith.constant 3.200000e+01 : f32
    %149 = vector.broadcast %cst_70 : f32 to vector<16x1xf32>
    %150 = arith.divf %148, %149 : vector<16x1xf32>
    %151 = vector.broadcast %143 : vector<16x1xf32> to vector<16x32xf32>
    %152 = arith.subf %135, %151 : vector<16x32xf32>
    %cst_71 = arith.constant 9.99999974E-6 : f32
    %153 = vector.broadcast %cst_71 : f32 to vector<16x1xf32>
    %154 = arith.addf %150, %153 : vector<16x1xf32>
    %155 = math.rsqrt %154 : vector<16x1xf32>
    %156 = vector.broadcast %155 : vector<16x1xf32> to vector<16x32xf32>
    %157 = arith.mulf %152, %156 : vector<16x32xf32>
    %158 = vector.broadcast %137 : vector<1x32xf32> to vector<16x32xf32>
    %159 = arith.mulf %157, %158 : vector<16x32xf32>
    %160 = vector.broadcast %139 : vector<1x32xf32> to vector<16x32xf32>
    %161 = arith.addf %159, %160 : vector<16x32xf32>
    %c1 = arith.constant 1 : index
    %c0_72 = arith.constant 0 : index
    %c0_73 = arith.constant 0 : index
    %162 = vector.load %arg1[%c1, %c0_72, %c0_73] : memref<2x32x96xf32, #tpu.memory_space<vmem>>, vector<1x32x96xf32>
    %163 = vector.shape_cast %162 : vector<1x32x96xf32> to vector<32x96xf32>
    %cst_74 = arith.constant dense<0.000000e+00> : vector<16x96xf32>
    %164 = tpu.matmul %161, %163, %cst_74 {dimension_numbers = #tpu.dot_dimension_numbers<[1], [0], [0], [1], [0, 0, 1, 1], [], []>} : vector<16x32xf32>, vector<32x96xf32>, vector<16x96xf32> -> vector<16x96xf32>
    %c1_75 = arith.constant 1 : index
    %c0_76 = arith.constant 0 : index
    %c0_77 = arith.constant 0 : index
    %165 = vector.load %arg2[%c1_75, %c0_76, %c0_77] : memref<2x1x96xf32, #tpu.memory_space<vmem>>, vector<1x1x96xf32>
    %166 = vector.shape_cast %165 : vector<1x1x96xf32> to vector<1x96xf32>
    %167 = vector.broadcast %166 : vector<1x96xf32> to vector<16x96xf32>
    %168 = arith.addf %164, %167 : vector<16x96xf32>
    %169 = vector.extract_strided_slice %168 {offsets = [0, 0], sizes = [16, 32], strides = [1, 1]} : vector<16x96xf32> to vector<16x32xf32>
    %170 = vector.shape_cast %169 : vector<16x32xf32> to vector<2x8x32xf32>
    %171 = vector.extract_strided_slice %168 {offsets = [0, 32], sizes = [16, 32], strides = [1, 1]} : vector<16x96xf32> to vector<16x32xf32>
    %172 = vector.shape_cast %171 : vector<16x32xf32> to vector<2x8x32xf32>
    %173 = vector.extract_strided_slice %168 {offsets = [0, 64], sizes = [16, 32], strides = [1, 1]} : vector<16x96xf32> to vector<16x32xf32>
    %174 = vector.shape_cast %173 : vector<16x32xf32> to vector<2x8x32xf32>
    %175 = vector.extract_strided_slice %170 {offsets = [0, 0, 0], sizes = [2, 8, 8], strides = [1, 1, 1]} : vector<2x8x32xf32> to vector<2x8x8xf32>
    %176 = vector.extract_strided_slice %172 {offsets = [0, 0, 0], sizes = [2, 8, 8], strides = [1, 1, 1]} : vector<2x8x32xf32> to vector<2x8x8xf32>
    %177 = vector.extract_strided_slice %174 {offsets = [0, 0, 0], sizes = [2, 8, 8], strides = [1, 1, 1]} : vector<2x8x32xf32> to vector<2x8x8xf32>
    "tpu.trace_start"() <{level = 10 : i32, message = "bqd,bkd->bqk"}> : () -> ()
    %cst_78 = arith.constant dense<0.000000e+00> : vector<2x8x8xf32>
    %178 = tpu.matmul %175, %176, %cst_78 {dimension_numbers = #tpu.dot_dimension_numbers<[2], [2], [1], [1], [0, 0, 0, 1, 1, 1], [0], [0]>} : vector<2x8x8xf32>, vector<2x8x8xf32>, vector<2x8x8xf32> -> vector<2x8x8xf32>
    "tpu.trace_stop"() : () -> ()
    %cst_79 = arith.constant 0.353553385 : f32
    %179 = vector.broadcast %cst_79 : f32 to vector<2x8x8xf32>
    %180 = arith.mulf %178, %179 : vector<2x8x8xf32>
    %cst_80 = arith.constant dense<0xFF800000> : vector<2x8xf32>
    %181 = vector.multi_reduction <maximumf>, %180, %cst_80 [2] : vector<2x8x8xf32> to vector<2x8xf32>
    %182 = vector.shape_cast %181 : vector<2x8xf32> to vector<2x8x1xf32>
    %183 = vector.broadcast %182 : vector<2x8x1xf32> to vector<2x8x8xf32>
    %184 = arith.subf %180, %183 : vector<2x8x8xf32>
    %185 = math.exp %184 : vector<2x8x8xf32>
    %cst_81 = arith.constant dense<0.000000e+00> : vector<2x8xf32>
    %186 = vector.multi_reduction <add>, %185, %cst_81 [2] : vector<2x8x8xf32> to vector<2x8xf32>
    %187 = vector.shape_cast %186 : vector<2x8xf32> to vector<2x8x1xf32>
    %188 = tpu.reciprocal %187 {approx = true} : vector<2x8x1xf32> -> vector<2x8x1xf32>
    %189 = vector.broadcast %188 : vector<2x8x1xf32> to vector<2x8x8xf32>
    %190 = arith.mulf %185, %189 : vector<2x8x8xf32>
    "tpu.trace_start"() <{level = 10 : i32, message = "bqk,bkd->bqd"}> : () -> ()
    %cst_82 = arith.constant dense<0.000000e+00> : vector<2x8x8xf32>
    %191 = tpu.matmul %190, %177, %cst_82 {dimension_numbers = #tpu.dot_dimension_numbers<[2], [1], [1], [2], [0, 0, 0, 1, 1, 2], [0], [0]>} : vector<2x8x8xf32>, vector<2x8x8xf32>, vector<2x8x8xf32> -> vector<2x8x8xf32>
    "tpu.trace_stop"() : () -> ()
    %192 = vector.extract_strided_slice %170 {offsets = [0, 0, 8], sizes = [2, 8, 8], strides = [1, 1, 1]} : vector<2x8x32xf32> to vector<2x8x8xf32>
    %193 = vector.extract_strided_slice %172 {offsets = [0, 0, 8], sizes = [2, 8, 8], strides = [1, 1, 1]} : vector<2x8x32xf32> to vector<2x8x8xf32>
    %194 = vector.extract_strided_slice %174 {offsets = [0, 0, 8], sizes = [2, 8, 8], strides = [1, 1, 1]} : vector<2x8x32xf32> to vector<2x8x8xf32>
    "tpu.trace_start"() <{level = 10 : i32, message = "bqd,bkd->bqk"}> : () -> ()
    %cst_83 = arith.constant dense<0.000000e+00> : vector<2x8x8xf32>
    %195 = tpu.matmul %192, %193, %cst_83 {dimension_numbers = #tpu.dot_dimension_numbers<[2], [2], [1], [1], [0, 0, 0, 1, 1, 1], [0], [0]>} : vector<2x8x8xf32>, vector<2x8x8xf32>, vector<2x8x8xf32> -> vector<2x8x8xf32>
    "tpu.trace_stop"() : () -> ()
    %cst_84 = arith.constant 0.353553385 : f32
    %196 = vector.broadcast %cst_84 : f32 to vector<2x8x8xf32>
    %197 = arith.mulf %195, %196 : vector<2x8x8xf32>
    %cst_85 = arith.constant dense<0xFF800000> : vector<2x8xf32>
    %198 = vector.multi_reduction <maximumf>, %197, %cst_85 [2] : vector<2x8x8xf32> to vector<2x8xf32>
    %199 = vector.shape_cast %198 : vector<2x8xf32> to vector<2x8x1xf32>
    %200 = vector.broadcast %199 : vector<2x8x1xf32> to vector<2x8x8xf32>
    %201 = arith.subf %197, %200 : vector<2x8x8xf32>
    %202 = math.exp %201 : vector<2x8x8xf32>
    %cst_86 = arith.constant dense<0.000000e+00> : vector<2x8xf32>
    %203 = vector.multi_reduction <add>, %202, %cst_86 [2] : vector<2x8x8xf32> to vector<2x8xf32>
    %204 = vector.shape_cast %203 : vector<2x8xf32> to vector<2x8x1xf32>
    %205 = tpu.reciprocal %204 {approx = true} : vector<2x8x1xf32> -> vector<2x8x1xf32>
    %206 = vector.broadcast %205 : vector<2x8x1xf32> to vector<2x8x8xf32>
    %207 = arith.mulf %202, %206 : vector<2x8x8xf32>
    "tpu.trace_start"() <{level = 10 : i32, message = "bqk,bkd->bqd"}> : () -> ()
    %cst_87 = arith.constant dense<0.000000e+00> : vector<2x8x8xf32>
    %208 = tpu.matmul %207, %194, %cst_87 {dimension_numbers = #tpu.dot_dimension_numbers<[2], [1], [1], [2], [0, 0, 0, 1, 1, 2], [0], [0]>} : vector<2x8x8xf32>, vector<2x8x8xf32>, vector<2x8x8xf32> -> vector<2x8x8xf32>
    "tpu.trace_stop"() : () -> ()
    %209 = vector.extract_strided_slice %170 {offsets = [0, 0, 16], sizes = [2, 8, 8], strides = [1, 1, 1]} : vector<2x8x32xf32> to vector<2x8x8xf32>
    %210 = vector.extract_strided_slice %172 {offsets = [0, 0, 16], sizes = [2, 8, 8], strides = [1, 1, 1]} : vector<2x8x32xf32> to vector<2x8x8xf32>
    %211 = vector.extract_strided_slice %174 {offsets = [0, 0, 16], sizes = [2, 8, 8], strides = [1, 1, 1]} : vector<2x8x32xf32> to vector<2x8x8xf32>
    "tpu.trace_start"() <{level = 10 : i32, message = "bqd,bkd->bqk"}> : () -> ()
    %cst_88 = arith.constant dense<0.000000e+00> : vector<2x8x8xf32>
    %212 = tpu.matmul %209, %210, %cst_88 {dimension_numbers = #tpu.dot_dimension_numbers<[2], [2], [1], [1], [0, 0, 0, 1, 1, 1], [0], [0]>} : vector<2x8x8xf32>, vector<2x8x8xf32>, vector<2x8x8xf32> -> vector<2x8x8xf32>
    "tpu.trace_stop"() : () -> ()
    %cst_89 = arith.constant 0.353553385 : f32
    %213 = vector.broadcast %cst_89 : f32 to vector<2x8x8xf32>
    %214 = arith.mulf %212, %213 : vector<2x8x8xf32>
    %cst_90 = arith.constant dense<0xFF800000> : vector<2x8xf32>
    %215 = vector.multi_reduction <maximumf>, %214, %cst_90 [2] : vector<2x8x8xf32> to vector<2x8xf32>
    %216 = vector.shape_cast %215 : vector<2x8xf32> to vector<2x8x1xf32>
    %217 = vector.broadcast %216 : vector<2x8x1xf32> to vector<2x8x8xf32>
    %218 = arith.subf %214, %217 : vector<2x8x8xf32>
    %219 = math.exp %218 : vector<2x8x8xf32>
    %cst_91 = arith.constant dense<0.000000e+00> : vector<2x8xf32>
    %220 = vector.multi_reduction <add>, %219, %cst_91 [2] : vector<2x8x8xf32> to vector<2x8xf32>
    %221 = vector.shape_cast %220 : vector<2x8xf32> to vector<2x8x1xf32>
    %222 = tpu.reciprocal %221 {approx = true} : vector<2x8x1xf32> -> vector<2x8x1xf32>
    %223 = vector.broadcast %222 : vector<2x8x1xf32> to vector<2x8x8xf32>
    %224 = arith.mulf %219, %223 : vector<2x8x8xf32>
    "tpu.trace_start"() <{level = 10 : i32, message = "bqk,bkd->bqd"}> : () -> ()
    %cst_92 = arith.constant dense<0.000000e+00> : vector<2x8x8xf32>
    %225 = tpu.matmul %224, %211, %cst_92 {dimension_numbers = #tpu.dot_dimension_numbers<[2], [1], [1], [2], [0, 0, 0, 1, 1, 2], [0], [0]>} : vector<2x8x8xf32>, vector<2x8x8xf32>, vector<2x8x8xf32> -> vector<2x8x8xf32>
    "tpu.trace_stop"() : () -> ()
    %226 = vector.extract_strided_slice %170 {offsets = [0, 0, 24], sizes = [2, 8, 8], strides = [1, 1, 1]} : vector<2x8x32xf32> to vector<2x8x8xf32>
    %227 = vector.extract_strided_slice %172 {offsets = [0, 0, 24], sizes = [2, 8, 8], strides = [1, 1, 1]} : vector<2x8x32xf32> to vector<2x8x8xf32>
    %228 = vector.extract_strided_slice %174 {offsets = [0, 0, 24], sizes = [2, 8, 8], strides = [1, 1, 1]} : vector<2x8x32xf32> to vector<2x8x8xf32>
    "tpu.trace_start"() <{level = 10 : i32, message = "bqd,bkd->bqk"}> : () -> ()
    %cst_93 = arith.constant dense<0.000000e+00> : vector<2x8x8xf32>
    %229 = tpu.matmul %226, %227, %cst_93 {dimension_numbers = #tpu.dot_dimension_numbers<[2], [2], [1], [1], [0, 0, 0, 1, 1, 1], [0], [0]>} : vector<2x8x8xf32>, vector<2x8x8xf32>, vector<2x8x8xf32> -> vector<2x8x8xf32>
    "tpu.trace_stop"() : () -> ()
    %cst_94 = arith.constant 0.353553385 : f32
    %230 = vector.broadcast %cst_94 : f32 to vector<2x8x8xf32>
    %231 = arith.mulf %229, %230 : vector<2x8x8xf32>
    %cst_95 = arith.constant dense<0xFF800000> : vector<2x8xf32>
    %232 = vector.multi_reduction <maximumf>, %231, %cst_95 [2] : vector<2x8x8xf32> to vector<2x8xf32>
    %233 = vector.shape_cast %232 : vector<2x8xf32> to vector<2x8x1xf32>
    %234 = vector.broadcast %233 : vector<2x8x1xf32> to vector<2x8x8xf32>
    %235 = arith.subf %231, %234 : vector<2x8x8xf32>
    %236 = math.exp %235 : vector<2x8x8xf32>
    %cst_96 = arith.constant dense<0.000000e+00> : vector<2x8xf32>
    %237 = vector.multi_reduction <add>, %236, %cst_96 [2] : vector<2x8x8xf32> to vector<2x8xf32>
    %238 = vector.shape_cast %237 : vector<2x8xf32> to vector<2x8x1xf32>
    %239 = tpu.reciprocal %238 {approx = true} : vector<2x8x1xf32> -> vector<2x8x1xf32>
    %240 = vector.broadcast %239 : vector<2x8x1xf32> to vector<2x8x8xf32>
    %241 = arith.mulf %236, %240 : vector<2x8x8xf32>
    "tpu.trace_start"() <{level = 10 : i32, message = "bqk,bkd->bqd"}> : () -> ()
    %cst_97 = arith.constant dense<0.000000e+00> : vector<2x8x8xf32>
    %242 = tpu.matmul %241, %228, %cst_97 {dimension_numbers = #tpu.dot_dimension_numbers<[2], [1], [1], [2], [0, 0, 0, 1, 1, 2], [0], [0]>} : vector<2x8x8xf32>, vector<2x8x8xf32>, vector<2x8x8xf32> -> vector<2x8x8xf32>
    "tpu.trace_stop"() : () -> ()
    %243 = tpu.concatenate %191, %208, %225, %242 in 2 : vector<2x8x8xf32>, vector<2x8x8xf32>, vector<2x8x8xf32>, vector<2x8x8xf32> -> vector<2x8x32xf32>
    %244 = vector.shape_cast %243 : vector<2x8x32xf32> to vector<16x32xf32>
    %c1_98 = arith.constant 1 : index
    %c0_99 = arith.constant 0 : index
    %c0_100 = arith.constant 0 : index
    %245 = vector.load %arg3[%c1_98, %c0_99, %c0_100] : memref<2x32x32xf32, #tpu.memory_space<vmem>>, vector<1x32x32xf32>
    %246 = vector.shape_cast %245 : vector<1x32x32xf32> to vector<32x32xf32>
    %cst_101 = arith.constant dense<0.000000e+00> : vector<16x32xf32>
    %247 = tpu.matmul %244, %246, %cst_101 {dimension_numbers = #tpu.dot_dimension_numbers<[1], [0], [0], [1], [0, 0, 1, 1], [], []>} : vector<16x32xf32>, vector<32x32xf32>, vector<16x32xf32> -> vector<16x32xf32>
    %c1_102 = arith.constant 1 : index
    %c0_103 = arith.constant 0 : index
    %c0_104 = arith.constant 0 : index
    %248 = vector.load %arg4[%c1_102, %c0_103, %c0_104] : memref<2x1x32xf32, #tpu.memory_space<vmem>>, vector<1x1x32xf32>
    %249 = vector.shape_cast %248 : vector<1x1x32xf32> to vector<1x32xf32>
    %250 = vector.broadcast %249 : vector<1x32xf32> to vector<16x32xf32>
    %251 = arith.addf %247, %250 : vector<16x32xf32>
    %252 = arith.addf %161, %251 : vector<16x32xf32>
    %c1_105 = arith.constant 1 : index
    %c0_106 = arith.constant 0 : index
    %c0_107 = arith.constant 0 : index
    %253 = vector.load %arg5[%c1_105, %c0_106, %c0_107] : memref<2x1x32xf32, #tpu.memory_space<vmem>>, vector<1x1x32xf32>
    %254 = vector.shape_cast %253 : vector<1x1x32xf32> to vector<1x32xf32>
    %c1_108 = arith.constant 1 : index
    %c0_109 = arith.constant 0 : index
    %c0_110 = arith.constant 0 : index
    %255 = vector.load %arg6[%c1_108, %c0_109, %c0_110] : memref<2x1x32xf32, #tpu.memory_space<vmem>>, vector<1x1x32xf32>
    %256 = vector.shape_cast %255 : vector<1x1x32xf32> to vector<1x32xf32>
    %cst_111 = arith.constant dense<0.000000e+00> : vector<16xf32>
    %257 = vector.multi_reduction <add>, %252, %cst_111 [1] : vector<16x32xf32> to vector<16xf32>
    %258 = vector.shape_cast %257 : vector<16xf32> to vector<16x1xf32>
    %cst_112 = arith.constant 3.200000e+01 : f32
    %259 = vector.broadcast %cst_112 : f32 to vector<16x1xf32>
    %260 = arith.divf %258, %259 : vector<16x1xf32>
    %261 = vector.broadcast %260 : vector<16x1xf32> to vector<16x32xf32>
    %262 = arith.subf %252, %261 : vector<16x32xf32>
    %263 = arith.mulf %262, %262 : vector<16x32xf32>
    %cst_113 = arith.constant dense<0.000000e+00> : vector<16xf32>
    %264 = vector.multi_reduction <add>, %263, %cst_113 [1] : vector<16x32xf32> to vector<16xf32>
    %265 = vector.shape_cast %264 : vector<16xf32> to vector<16x1xf32>
    %cst_114 = arith.constant 3.200000e+01 : f32
    %266 = vector.broadcast %cst_114 : f32 to vector<16x1xf32>
    %267 = arith.divf %265, %266 : vector<16x1xf32>
    %268 = vector.broadcast %260 : vector<16x1xf32> to vector<16x32xf32>
    %269 = arith.subf %252, %268 : vector<16x32xf32>
    %cst_115 = arith.constant 9.99999974E-6 : f32
    %270 = vector.broadcast %cst_115 : f32 to vector<16x1xf32>
    %271 = arith.addf %267, %270 : vector<16x1xf32>
    %272 = math.rsqrt %271 : vector<16x1xf32>
    %273 = vector.broadcast %272 : vector<16x1xf32> to vector<16x32xf32>
    %274 = arith.mulf %269, %273 : vector<16x32xf32>
    %275 = vector.broadcast %254 : vector<1x32xf32> to vector<16x32xf32>
    %276 = arith.mulf %274, %275 : vector<16x32xf32>
    %277 = vector.broadcast %256 : vector<1x32xf32> to vector<16x32xf32>
    %278 = arith.addf %276, %277 : vector<16x32xf32>
    %c1_116 = arith.constant 1 : index
    %c0_117 = arith.constant 0 : index
    %c0_118 = arith.constant 0 : index
    %279 = vector.load %arg7[%c1_116, %c0_117, %c0_118] : memref<2x32x64xf32, #tpu.memory_space<vmem>>, vector<1x32x64xf32>
    %280 = vector.shape_cast %279 : vector<1x32x64xf32> to vector<32x64xf32>
    %cst_119 = arith.constant dense<0.000000e+00> : vector<16x64xf32>
    %281 = tpu.matmul %278, %280, %cst_119 {dimension_numbers = #tpu.dot_dimension_numbers<[1], [0], [0], [1], [0, 0, 1, 1], [], []>} : vector<16x32xf32>, vector<32x64xf32>, vector<16x64xf32> -> vector<16x64xf32>
    %c1_120 = arith.constant 1 : index
    %c0_121 = arith.constant 0 : index
    %c0_122 = arith.constant 0 : index
    %282 = vector.load %arg8[%c1_120, %c0_121, %c0_122] : memref<2x1x64xf32, #tpu.memory_space<vmem>>, vector<1x1x64xf32>
    %283 = vector.shape_cast %282 : vector<1x1x64xf32> to vector<1x64xf32>
    %284 = vector.broadcast %283 : vector<1x64xf32> to vector<16x64xf32>
    %285 = arith.addf %281, %284 : vector<16x64xf32>
    %cst_123 = arith.constant 0.000000e+00 : f32
    %286 = vector.broadcast %cst_123 : f32 to vector<16x64xf32>
    %287 = arith.maximumf %285, %286 : vector<16x64xf32>
    %c1_124 = arith.constant 1 : index
    %c0_125 = arith.constant 0 : index
    %c0_126 = arith.constant 0 : index
    %288 = vector.load %arg9[%c1_124, %c0_125, %c0_126] : memref<2x64x32xf32, #tpu.memory_space<vmem>>, vector<1x64x32xf32>
    %289 = vector.shape_cast %288 : vector<1x64x32xf32> to vector<64x32xf32>
    %cst_127 = arith.constant dense<0.000000e+00> : vector<16x32xf32>
    %290 = tpu.matmul %287, %289, %cst_127 {dimension_numbers = #tpu.dot_dimension_numbers<[1], [0], [0], [1], [0, 0, 1, 1], [], []>} : vector<16x64xf32>, vector<64x32xf32>, vector<16x32xf32> -> vector<16x32xf32>
    %c1_128 = arith.constant 1 : index
    %c0_129 = arith.constant 0 : index
    %c0_130 = arith.constant 0 : index
    %291 = vector.load %arg10[%c1_128, %c0_129, %c0_130] : memref<2x1x32xf32, #tpu.memory_space<vmem>>, vector<1x1x32xf32>
    %292 = vector.shape_cast %291 : vector<1x1x32xf32> to vector<1x32xf32>
    %293 = vector.broadcast %292 : vector<1x32xf32> to vector<16x32xf32>
    %294 = arith.addf %290, %293 : vector<16x32xf32>
    %295 = arith.addf %278, %294 : vector<16x32xf32>
    %c1_131 = arith.constant 1 : index
    %c0_132 = arith.constant 0 : index
    %c0_133 = arith.constant 0 : index
    %296 = vector.load %arg11[%c1_131, %c0_132, %c0_133] : memref<2x1x32xf32, #tpu.memory_space<vmem>>, vector<1x1x32xf32>
    %297 = vector.shape_cast %296 : vector<1x1x32xf32> to vector<1x32xf32>
    %c1_134 = arith.constant 1 : index
    %c0_135 = arith.constant 0 : index
    %c0_136 = arith.constant 0 : index
    %298 = vector.load %arg12[%c1_134, %c0_135, %c0_136] : memref<2x1x32xf32, #tpu.memory_space<vmem>>, vector<1x1x32xf32>
    %299 = vector.shape_cast %298 : vector<1x1x32xf32> to vector<1x32xf32>
    %cst_137 = arith.constant dense<0.000000e+00> : vector<16xf32>
    %300 = vector.multi_reduction <add>, %295, %cst_137 [1] : vector<16x32xf32> to vector<16xf32>
    %301 = vector.shape_cast %300 : vector<16xf32> to vector<16x1xf32>
    %cst_138 = arith.constant 3.200000e+01 : f32
    %302 = vector.broadcast %cst_138 : f32 to vector<16x1xf32>
    %303 = arith.divf %301, %302 : vector<16x1xf32>
    %304 = vector.broadcast %303 : vector<16x1xf32> to vector<16x32xf32>
    %305 = arith.subf %295, %304 : vector<16x32xf32>
    %306 = arith.mulf %305, %305 : vector<16x32xf32>
    %cst_139 = arith.constant dense<0.000000e+00> : vector<16xf32>
    %307 = vector.multi_reduction <add>, %306, %cst_139 [1] : vector<16x32xf32> to vector<16xf32>
    %308 = vector.shape_cast %307 : vector<16xf32> to vector<16x1xf32>
    %cst_140 = arith.constant 3.200000e+01 : f32
    %309 = vector.broadcast %cst_140 : f32 to vector<16x1xf32>
    %310 = arith.divf %308, %309 : vector<16x1xf32>
    %311 = vector.broadcast %303 : vector<16x1xf32> to vector<16x32xf32>
    %312 = arith.subf %295, %311 : vector<16x32xf32>
    %cst_141 = arith.constant 9.99999974E-6 : f32
    %313 = vector.broadcast %cst_141 : f32 to vector<16x1xf32>
    %314 = arith.addf %310, %313 : vector<16x1xf32>
    %315 = math.rsqrt %314 : vector<16x1xf32>
    %316 = vector.broadcast %315 : vector<16x1xf32> to vector<16x32xf32>
    %317 = arith.mulf %312, %316 : vector<16x32xf32>
    %318 = vector.broadcast %297 : vector<1x32xf32> to vector<16x32xf32>
    %319 = arith.mulf %317, %318 : vector<16x32xf32>
    %320 = vector.broadcast %299 : vector<1x32xf32> to vector<16x32xf32>
    %321 = arith.addf %319, %320 : vector<16x32xf32>
    %c0_142 = arith.constant 0 : index
    %c0_143 = arith.constant 0 : index
    %322 = vector.load %arg13[%c0_142, %c0_143] : memref<32x128xf32, #tpu.memory_space<vmem>>, vector<32x128xf32>
    %cst_144 = arith.constant dense<0.000000e+00> : vector<16x128xf32>
    %323 = tpu.matmul %321, %322, %cst_144 {dimension_numbers = #tpu.dot_dimension_numbers<[1], [0], [0], [1], [0, 0, 1, 1], [], []>} : vector<16x32xf32>, vector<32x128xf32>, vector<16x128xf32> -> vector<16x128xf32>
    %c0_145 = arith.constant 0 : index
    %c0_146 = arith.constant 0 : index
    %324 = vector.load %arg14[%c0_145, %c0_146] : memref<1x128xf32, #tpu.memory_space<vmem>>, vector<1x128xf32>
    %325 = vector.broadcast %324 : vector<1x128xf32> to vector<16x128xf32>
    %326 = arith.addf %323, %325 : vector<16x128xf32>
    %c0_147 = arith.constant 0 : index
    %c0_148 = arith.constant 0 : index
    %327 = vector.load %arg15[%c0_147, %c0_148] : memref<16x128xf32, #tpu.memory_space<vmem>>, vector<16x128xf32>
    tpu.vector_store %arg15[%c0_147, %c0_148], %326 {strides = array<i32>} : memref<16x128xf32, #tpu.memory_space<vmem>>, vector<16x128xf32>,
    return
  }
}

</mosaic_0001>

<bundles_post_ra>
// kernel: tpu_custom_call.1
= control target key start
LH: loop header
LB: loop body
LE: loop exit
PB: predicated region body
PF: predicated region fallthrough
CT: control target
= control target key end

     0   :  { %s5463_s0 = inlined_call_operand.hbm [shape: f32[2,8,32], index: 0, kind: input, shape index: {}]   ;;  %s5464_s1 = inlined_call_operand.vmem [shape: f32[2,32,96], index: 1, kind: input, shape index: {}]   ;;  %s5465_s2 = inlined_call_operand.vmem [shape: f32[2,1,96], index: 2, kind: input, shape index: {}]   ;;  %s5466_s3 = inlined_call_operand.vmem [shape: f32[2,32,32], index: 3, kind: input, shape index: {}]   ;;  %s5467_s4 = inlined_call_operand.hbm [shape: f32[2,1,32], index: 4, kind: input, shape index: {}]   ;;  %s5468_s5 = inlined_call_operand.hbm [shape: f32[2,1,32], index: 5, kind: input, shape index: {}]   ;;  %s5469_s6 = inlined_call_operand.hbm [shape: f32[2,1,32], index: 6, kind: input, shape index: {}]   ;;  %s5470_s7 = inlined_call_operand.vmem [shape: f32[2,32,64], index: 7, kind: input, shape index: {}]   ;;  %s5471_s8 = inlined_call_operand.hbm [shape: f32[2,1,64], index: 8, kind: input, shape index: {}]   ;;  %s5472_s9 = inlined_call_operand.vmem [shape: f32[2,64,32], index: 9, kind: input, shape index: {}]   ;;  %s5473_s10 = inlined_call_operand.vmem [shape: f32[2,1,32], index: 10, kind: input, shape index: {}]   ;;  %s5474_s11 = inlined_call_operand.vmem [shape: f32[2,1,32], index: 11, kind: input, shape index: {}]   ;;  %s5475_s12 = inlined_call_operand.vmem [shape: f32[2,1,32], index: 12, kind: input, shape index: {}]   ;;  %s5476_s13 = inlined_call_operand.vmem [shape: f32[32,128], index: 13, kind: input, shape index: {}]   ;;  %s5477_s14 = inlined_call_operand.vmem [shape: f32[1,128], index: 14, kind: input, shape index: {}]   ;;  %s5478_s15 = inlined_call_operand.hbm [shape: f32[16,128], index: 15, kind: output, shape index: {}]  }
   0x1   :  { %5487 = sst [smem:[#allocation16_spill]] %s5478_s15 }
   0x2   :  { %20 = vsyncpa [#allocation3], 0 }
   0x3   :  { %21 = vsyncpa [#allocation6], 0 }
   0x4   :  { %22 = vsyncpa [#allocation9], 0 }
   0x5   :  { %23 = vsyncpa [#allocation4], 0  ;;  %s4736_s18 = smov [#allocation5]   ;;  %s4596_s22 = scalar_lea.hbm %s5467_s4, 32 }
   0x6   :  { %s47_s19 = sshll.u32 %s4736_s18, 4  ;;  %p4597_p0 = scmp.ne.s32.totalorder %s5467_s4, %s4596_s22  ;;  %s48_s19 = int_to_ptr.vmem [resolvable:$true] %s47_s19 }
   0x7   :  { %p4600_p1 = scmp.lt.u32.totalorder %s4596_s22, %s5467_s4 }
   0x9   :  { %p4602_p2 = pnand %p4600_p1, %p4597_p0 }
   0xb   :  { %4605 = shalt.err (!%p4602_p2)
}
   0xc   :  { %s4606_s27 = scalar_lea.vmem %s48_s19, 32  ;;  %p4611_p4 = scmp.lt.s32.totalorder %s48_s19, %s48_s19 }
   0xd   :  { %p4607_p3 = scmp.ne.s32.totalorder %s48_s19, %s4606_s27  ;;  %p4612_p5 = scmp.lt.s32.totalorder %s4606_s27, %s4606_s27 }
   0xf   :  { %p4613_p6 = por %p4612_p5, %p4611_p4 }
  0x11   :  { %p4614_p7 = pnand %p4613_p6, %p4607_p3 }
  0x13   :  { %4617 = shalt.err (!%p4614_p7)
}
  0x14   :  { %s5483_s28 = smov 16   ;;  %s4738_s29 = smov 1  }
  0x15   :  { %53 = dma.hbm_to_vmem [thread:$0]  %s5467_s4, 32, %s48_s19, [#allocation6], %s5483_s28, %s5483_s28, %s4738_s29  }
  0x16   :  { %s4739_s17 = smov [#allocation8]   ;;  %s4740_s20 = smov [#allocation2]  }
  0x17   :  { %s71_s18 = sshll.u32 %s4739_s17, 4  ;;  %s29_s21 = sshll.u32 %s4740_s20, 4  ;;  %s72_s18 = int_to_ptr.vmem [resolvable:$true] %s71_s18  ;;  %s30_s21 = int_to_ptr.vmem [resolvable:$true] %s29_s21 }
  0x18   :  { %s4618_s24 = scalar_lea.hbm %s5469_s6, 32 }
  0x19   :  { %p4619_p8 = scmp.ne.s32.totalorder %s5469_s6, %s4618_s24  ;;  %p4622_p9 = scmp.lt.u32.totalorder %s4618_s24, %s5469_s6 }
  0x1b   :  { %p4624_p10 = pnand %p4622_p9, %p4619_p8 }
  0x1d   :  { %4627 = shalt.err (!%p4624_p10)
}
  0x1e   :  { %s4628_s4 = scalar_lea.vmem %s72_s18, 32  ;;  %p4633_p12 = scmp.lt.s32.totalorder %s72_s18, %s72_s18 }
  0x1f   :  { %p4629_p11 = scmp.ne.s32.totalorder %s72_s18, %s4628_s4  ;;  %p4634_p13 = scmp.lt.s32.totalorder %s4628_s4, %s4628_s4 }
  0x21   :  { %p4635_p0 = por %p4634_p13, %p4633_p12 }
  0x23   :  { %p4636_p1 = pnand %p4635_p0, %p4629_p11 }
  0x25   :  { %4639 = shalt.err (!%p4636_p1)
}
  0x26   :  { %77 = dma.hbm_to_vmem [thread:$0]  %s5469_s6, 32, %s72_s18, [#allocation9], %s5483_s28, %s5483_s28, %s4738_s29  }
  0x27   :  { %s4640_s17 = scalar_lea.hbm %s5463_s0, 256 }
  0x28   :  { %p4641_p2 = scmp.ne.s32.totalorder %s5463_s0, %s4640_s17  ;;  %p4644_p3 = scmp.lt.u32.totalorder %s4640_s17, %s5463_s0 }
  0x2a   :  { %p4646_p4 = pnand %p4644_p3, %p4641_p2 }
  0x2c   :  { %4649 = shalt.err (!%p4646_p4)
}
  0x2d   :  { %s4650_s25 = scalar_lea.vmem %s30_s21, 256  ;;  %p4655_p6 = scmp.lt.s32.totalorder %s30_s21, %s30_s21 }
  0x2e   :  { %p4651_p5 = scmp.ne.s32.totalorder %s30_s21, %s4650_s25  ;;  %p4656_p7 = scmp.lt.s32.totalorder %s4650_s25, %s4650_s25 }
  0x30   :  { %p4657_p8 = por %p4656_p7, %p4655_p6 }
  0x32   :  { %p4658_p9 = pnand %p4657_p8, %p4651_p5 }
  0x34   :  { %4661 = shalt.err (!%p4658_p9)
}
  0x35   :  { %s5480_s6 = smov 128   ;;  %s5485_s18 = smov 8  }
  0x36   :  { %35 = dma.hbm_to_vmem [thread:$0]  %s5463_s0, 256, %s30_s21, [#allocation3], %s5480_s6, %s5480_s6, %s5485_s18  }
  0x37   :  { %s4743_s4 = smov [#allocation7]   ;;  %s4744_s30 = smov [#allocation10]  }
  0x38   :  { %s59_s19 = sshll.u32 %s4743_s4, 4  ;;  %s85_s16 = sshll.u32 %s4744_s30, 4  ;;  %s60_s19 = int_to_ptr.vmem [resolvable:$true] %s59_s19  ;;  %s86_s16 = int_to_ptr.vmem [resolvable:$true] %s85_s16 }
  0x39   :  { %s4662_s20 = scalar_lea.hbm %s5468_s5, 32 }
  0x3a   :  { %p4663_p10 = scmp.ne.s32.totalorder %s5468_s5, %s4662_s20  ;;  %p4666_p11 = scmp.lt.u32.totalorder %s4662_s20, %s5468_s5 }
  0x3c   :  { %p4668_p12 = pnand %p4666_p11, %p4663_p10 }
  0x3e   :  { %4671 = shalt.err (!%p4668_p12)
}
  0x3f   :  { %s4672_s0 = scalar_lea.vmem %s60_s19, 32  ;;  %p4677_p0 = scmp.lt.s32.totalorder %s60_s19, %s60_s19 }
  0x40   :  { %p4673_p13 = scmp.ne.s32.totalorder %s60_s19, %s4672_s0  ;;  %p4678_p1 = scmp.lt.s32.totalorder %s4672_s0, %s4672_s0 }
  0x42   :  { %p4679_p2 = por %p4678_p1, %p4677_p0 }
  0x44   :  { %p4680_p3 = pnand %p4679_p2, %p4673_p13 }
  0x46   :  { %4683 = shalt.err (!%p4680_p3)
}
  0x47   :  { %65 = dma.hbm_to_vmem [thread:$0]  %s5468_s5, 32, %s60_s19, [#allocation6], %s5483_s28, %s5483_s28, %s4738_s29  }
  0x48   :  { %s4684_s30 = scalar_lea.hbm %s5471_s8, 32 }
  0x49   :  { %p4685_p4 = scmp.ne.s32.totalorder %s5471_s8, %s4684_s30  ;;  %p4688_p5 = scmp.lt.u32.totalorder %s4684_s30, %s5471_s8 }
  0x4b   :  { %p4690_p6 = pnand %p4688_p5, %p4685_p4 }
  0x4d   :  { %4693 = shalt.err (!%p4690_p6)
}
  0x4e   :  { %s4694_s23 = scalar_lea.vmem %s86_s16, 32  ;;  %p4699_p8 = scmp.lt.s32.totalorder %s86_s16, %s86_s16 }
  0x4f   :  { %p4695_p7 = scmp.ne.s32.totalorder %s86_s16, %s4694_s23  ;;  %p4700_p9 = scmp.lt.s32.totalorder %s4694_s23, %s4694_s23 }
  0x51   :  { %p4701_p10 = por %p4700_p9, %p4699_p8 }
  0x53   :  { %p4702_p11 = pnand %p4701_p10, %p4695_p7 }
  0x55   :  { %4705 = shalt.err (!%p4702_p11)
}
  0x56   :  { %91 = dma.hbm_to_vmem [thread:$0]  %s5471_s8, 32, %s86_s16, [#allocation9], %s5483_s28, %s5483_s28, %s4738_s29  }
  0x57   :  { %4728 = dma.done.wait [#allocation3], 256  }
  0x58   :  { %4729 = vsyncadd [#allocation3], 4294967040 }
  0x59   :  { %4730 = dma.done.wait [#allocation6], 64  }
  0x5a   :  { %4731 = vsyncadd [#allocation6], 4294967232 }
  0x5b   :  { %4732 = dma.done.wait [#allocation9], 64  }
  0x5c   :  { %4733 = vsyncadd [#allocation9], 4294967232  ;;  %vm132_vm0 = vcmask 261120   ;;  %v121_v0 = vld [vmem:[%s5464_s1] sm:$0xff]  ;;  %v122_v1 = vld [vmem:[%s5464_s1 + $0x8] sm:$0xff]  ;;  %v4745_v8 = vmov 0.0  }
  0x5d   :  { %v123_v2 = vld [vmem:[%s5464_s1 + $0x10] sm:$0xff]  ;;  %v4404_v3 = vpack.c.bf16 %v122_v1, %v121_v0  ;;  %v124_v4 = vld [vmem:[%s5464_s1 + $0x18] sm:$0xff]  ;;  %v4927_v5 = vld [vmem:[#allocation2] sm:$0xff]  ;;  %4140 = vmatprep.subr.mxu1 %v4745_v8  ;;  %vm4746_vm1 = vmmov 0   ;;  %s4747_s30 = smov 96   ;;  %vm217_vm2 = vcmask 64512  }
  0x5e   :  { %v4408_v6 = vpack.c.bf16 %v124_v4, %v123_v2  ;;  %4137 = vmatprep.mubr.msk.f32.mxu0 %vm132_vm0, %v4927_v5  ;;  %v4931_v7 = vld [vmem:[#allocation2 + $0x8] sm:$0xff]  ;;  %4142 = vmatprep.mubr.msk.f32.mxu1 %vm4746_vm1, %v4745_v8  ;;  %v3896_v9 = vld [vmem:[%s5465_s2] ss:$0 sm:$0xff]  ;;  %s4748_s15 = smov 64   ;;  %s4749_s17 = smov 88   ;;  %vm1570_vm3 = vcmask 195584  }
  0x5f   :  { %4405 = vmatprep.subr.bf16.mxu0 %v4404_v3  ;;  %s4750_s20 = smov 120   ;;  %s4751_s22 = smov 56   ;;  %vm1567_vm4 = vcmask 130048   ;;  %vm1821_vm5 = vcmask 523264  }
  0x60   :  { %4407 = vmatpush3.bf16.msra.mxu0 %v4404_v3  ;;  %s4752_s23 = smov 112   ;;  %s4753_s5 = smov 80  }
  0x61   :  { %4409 = vmatprep.subr.bf16.mxu0 %v4408_v6  ;;  %s4754_s19 = smov 48   ;;  %s4755_s24 = smov 72  }
  0x62   :  { %s4756_s25 = smov 104   ;;  %s4757_s0 = smov 40  }
  0x63   :  { %s5481_s21 = smov 24  }
  0x64   :  { %4411 = vmatpush3.bf16.msra.mxu0 %v4408_v6 }
  0x65   :  { %4160 = vmatprep.subr.mxu0 %v4745_v8 }
  0x67   :  { %4138 = vmatmul.mubr.msk.f32.vlgmr.msra.gmra.mrb[0].mxu0 %vm132_vm0, %v4931_v7 }
  0x68   :  { %4162 = vmatprep.mubr.msk.f32.mxu0 %vm4746_vm1, %v4745_v8 }
 0x13a   :  { %v4139_v10 = vpop.f32.mrb[0].mxu0 }
 0x13b   :  { %v205_v11 = vpop.f32.mrb[1].mxu0  ;;  %v4948_v13 = vadd.f32 %v4139_v10, %v3896_v9 }
 0x13c   :  { %v4944_v12 = vadd.f32 %v3896_v9, %v205_v11 }
 0x13e   :  { %215 = vrot.lane.b32.xlu0 %v4944_v12, %s4747_s30 }
 0x142   :  { %293 = vrot.lane.b32.xlu0 %v4948_v13, %s4747_s30 }
 0x1b0   :  { %v216_v14 = vpop.permute.xlu0 %215 }
 0x1b1   :  { %4141 = vmatpush3.xpose.msk.msra.mxu1 %vm217_vm2, %v216_v14 }
 0x1b2   :  { %4145 = vmatprep.subr.mxu1 %v4745_v8 }
 0x1b4   :  { %4143 = vmatmul.mubr.msk.f32.vlgmr.msra.gmra.mrb[0].mxu1 %vm217_vm2, %v4944_v12  ;;  %v294_v15 = vpop.permute.xlu0 %293 }
 0x1b5   :  { %4146 = vmatpush3.xpose.msk.msra.mxu1 %vm217_vm2, %v294_v15  ;;  %4147 = vmatprep.mubr.msk.f32.mxu1 %vm4746_vm1, %v4745_v8 }
 0x1b6   :  { %4150 = vmatprep.subr.mxu1 %v4745_v8 }
 0x1b8   :  { %4148 = vmatmul.mubr.msk.f32.vlgmr.msra.gmra.mrb[2].mxu1 %vm217_vm2, %v4948_v13 }
 0x1b9   :  { %4152 = vmatprep.mubr.msk.f32.mxu1 %vm4746_vm1, %v4745_v8 }
 0x287   :  { %v288_v16 = vpop.f32.mrb[0].mxu1 }
 0x288   :  { %v369_v17 = vmul.f32 0.35355338, %v288_v16  ;;  %v4144_v18 = vpop.f32.mrb[1].mxu1 }
 0x28a   :  { %v371_v19 = vsel %vm217_vm2, %v369_v17, -inf }
 0x28b   :  { %372 = vmax.xlane.f32.xlu1 %v371_v19  ;;  %v365_v20 = vpop.f32.mrb[2].mxu1 }
 0x28c   :  { %v370_v21 = vmul.f32 0.35355338, %v365_v20  ;;  %v4149_v22 = vpop.f32.mrb[3].mxu1 }
 0x28e   :  { %v374_v23 = vsel %vm217_vm2, %v370_v21, -inf }
 0x28f   :  { %375 = vmax.xlane.f32.xlu1 %v374_v23 }
 0x2a0   :  { %393 = vrot.lane.b32.xlu1 %v4944_v12, %s4748_s15 }
 0x2a4   :  { %469 = vrot.lane.b32.xlu1 %v4948_v13, %s4748_s15 }
 0x2a8   :  { %547 = vrot.lane.b32.xlu1 %v4944_v12, %s4749_s17 }
 0x2ac   :  { %625 = vrot.lane.b32.xlu1 %v4948_v13, %s4749_s17 }
 0x318   :  { %v373_v24 = vpop.xlane.xlu1 %372 }
 0x319   :  { %v377_v25 = vsub.f32 %v369_v17, %v373_v24 }
 0x31b   :  { %v379_v26 = vmul.f32 1.442695, %v377_v25 }
 0x31c   :  { %v376_v27 = vpop.xlane.xlu1 %375 }
 0x31d   :  { %4516 = vpow2.f32 %v379_v26  ;;  %v378_v28 = vsub.f32 %v370_v21, %v376_v27 }
 0x31f   :  { %v381_v29 = vmul.f32 1.442695, %v378_v28 }
 0x320   :  { %v394_v30 = vpop.permute.xlu1 %393 }
 0x321   :  { %4518 = vpow2.f32 %v381_v29  ;;  %4151 = vmatpush3.msra.mxu1 %v394_v30 }
 0x322   :  { %4155 = vmatprep.subr.mxu1 %v4745_v8 }
 0x324   :  { %v470_v31 = vpop.permute.xlu1 %469 }
 0x327   :  { %v4517_v32 = vpop.eup %4516 }
 0x328   :  { %v548_v33 = vpop.permute.xlu1 %547  ;;  %v383_v34 = vsel %vm217_vm2, %v4517_v32, 0.0 }
 0x329   :  { %384 = vadd.xlane.f32.xlu0 %v383_v34  ;;  %4161 = vmatpush3.xpose.msk.msra.mxu0 %vm217_vm2, %v548_v33 }
 0x32a   :  { %4170 = vmatprep.subr.mxu0 %v4745_v8 }
 0x32b   :  { %v4519_v35 = vpop.eup %4518 }
 0x32c   :  { %v386_v36 = vsel %vm217_vm2, %v4519_v35, 0.0  ;;  %v626_v37 = vpop.permute.xlu1 %625 }
 0x32d   :  { %387 = vadd.xlane.f32.xlu1 %v386_v36 }
 0x33e   :  { %623 = vrot.lane.b32.xlu1 %v4948_v13, %s4750_s20 }
 0x33f   :  { %545 = vrot.lane.b32.xlu0 %v4944_v12, %s4750_s20 }
 0x3b6   :  { %v385_v38 = vpop.xlane.xlu0 %384 }
 0x3b7   :  { %4520 = vrcp.f32 %v385_v38 }
 0x3ba   :  { %v388_v39 = vpop.xlane.xlu1 %387  ;;  %v546_v40 = vpop.permute.xlu0 %545 }
 0x3bb   :  { %4522 = vrcp.f32 %v388_v39  ;;  %4163 = vmatmul.mubr.msk.f32.vlgmr.msra.gmra.mrb[2].mxu0 %vm217_vm2, %v546_v40 }
 0x3bc   :  { %4172 = vmatprep.mubr.msk.f32.mxu0 %vm4746_vm1, %v4745_v8 }
 0x3be   :  { %v624_v45 = vpop.permute.xlu1 %623 }
 0x3c1   :  { %v4521_v41 = vpop.eup %4520 }
 0x3c2   :  { %v391_v42 = vmul.f32 %v4521_v41, %v4517_v32 }
 0x3c4   :  { %4153 = vmatmul.mubr.msk.f32.vlgmr.msra.gmra.mrb[4].mxu1 %vm217_vm2, %v391_v42 }
 0x3c5   :  { %v4523_v43 = vpop.eup %4522  ;;  %4156 = vmatpush3.msra.mxu1 %v470_v31  ;;  %4157 = vmatprep.mubr.msk.f32.mxu1 %vm4746_vm1, %v4745_v8 }
 0x3c6   :  { %v392_v44 = vmul.f32 %v4523_v43, %v4519_v35  ;;  %4165 = vmatprep.subr.mxu1 %v4745_v8 }
 0x3c8   :  { %4158 = vmatmul.mubr.msk.f32.vlgmr.msra.gmra.mrb[6].mxu1 %vm217_vm2, %v392_v44 }
 0x3c9   :  { %4167 = vmatprep.mubr.msk.f32.mxu1 %vm4746_vm1, %v4745_v8 }
 0x3cc   :  { %4166 = vmatpush3.xpose.msk.msra.mxu1 %vm217_vm2, %v626_v37 }
 0x3cd   :  { %4175 = vmatprep.subr.mxu1 %v4745_v8 }
 0x3cf   :  { %4168 = vmatmul.mubr.msk.f32.vlgmr.msra.gmra.mrb[8].mxu1 %vm217_vm2, %v624_v45 }
 0x3d0   :  { %4177 = vmatprep.mubr.msk.f32.mxu1 %vm4746_vm1, %v4745_v8 }
 0x48e   :  { %v619_v46 = vpop.f32.mrb[2].mxu0 }
 0x48f   :  { %v701_v47 = vmul.f32 0.35355338, %v619_v46  ;;  %v4164_v48 = vpop.f32.mrb[3].mxu0 }
 0x491   :  { %v703_v49 = vsel %vm217_vm2, %v701_v47, -inf }
 0x492   :  { %704 = vmax.xlane.f32.xlu1 %v703_v49 }
 0x497   :  { %v4999_v50 = vpop.f32.mrb[4].mxu1 }
 0x498   :  { %v4154_v51 = vpop.f32.mrb[5].mxu1 }
 0x49b   :  { %v5001_v52 = vpop.f32.mrb[6].mxu1 }
 0x49c   :  { %v4159_v53 = vpop.f32.mrb[7].mxu1 }
 0x4a2   :  { %v697_v54 = vpop.f32.mrb[8].mxu1 }
 0x4a3   :  { %v702_v55 = vmul.f32 0.35355338, %v697_v54  ;;  %v4169_v56 = vpop.f32.mrb[9].mxu1 }
 0x4a5   :  { %v706_v57 = vsel %vm217_vm2, %v702_v55, -inf }
 0x4a6   :  { %707 = vmax.xlane.f32.xlu0 %v706_v57 }
 0x4bc   :  { %801 = vrot.lane.b32.xlu0 %v4948_v13, %s4751_s22 }
 0x4c0   :  { %877 = vrot.lane.b32.xlu0 %v4944_v12, %s4752_s23 }
 0x51f   :  { %v705_v58 = vpop.xlane.xlu1 %704 }
 0x520   :  { %v709_v59 = vsub.f32 %v701_v47, %v705_v58 }
 0x522   :  { %v711_v60 = vmul.f32 1.442695, %v709_v59 }
 0x524   :  { %4524 = vpow2.f32 %v711_v60 }
 0x52e   :  { %v4525_v61 = vpop.eup %4524 }
 0x52f   :  { %v715_v62 = vsel %vm217_vm2, %v4525_v61, 0.0 }
 0x530   :  { %716 = vadd.xlane.f32.xlu1 %v715_v62 }
 0x533   :  { %v708_v63 = vpop.xlane.xlu0 %707 }
 0x534   :  { %v710_v1 = vsub.f32 %v702_v55, %v708_v63 }
 0x536   :  { %v713_v2 = vmul.f32 1.442695, %v710_v1 }
 0x537   :  { %v802_v0 = vpop.permute.xlu0 %801 }
 0x538   :  { %4176 = vmatpush3.msra.mxu1 %v802_v0  ;;  %4526 = vpow2.f32 %v713_v2 }
 0x539   :  { %4185 = vmatprep.subr.mxu1 %v4745_v8 }
 0x53b   :  { %v878_v15 = vpop.permute.xlu0 %877 }
 0x541   :  { %725 = vrot.lane.b32.xlu1 %v4944_v12, %s4751_s22 }
 0x542   :  { %v4527_v3 = vpop.eup %4526 }
 0x543   :  { %v718_v4 = vsel %vm217_vm2, %v4527_v3, 0.0 }
 0x545   :  { %879 = vrot.lane.b32.xlu1 %v4944_v12, %s4753_s5 }
 0x549   :  { %957 = vrot.lane.b32.xlu1 %v4948_v13, %s4753_s5 }
 0x56d   :  { %719 = vadd.xlane.f32.xlu1 %v718_v4 }
 0x57e   :  { %955 = vrot.lane.b32.xlu1 %v4948_v13, %s4752_s23 }
 0x5bd   :  { %v717_v6 = vpop.xlane.xlu1 %716 }
 0x5be   :  { %4528 = vrcp.f32 %v717_v6 }
 0x5c1   :  { %v726_v9 = vpop.permute.xlu1 %725 }
 0x5c2   :  { %4171 = vmatpush3.msra.mxu0 %v726_v9 }
 0x5c3   :  { %4180 = vmatprep.subr.mxu0 %v4745_v8 }
 0x5c5   :  { %v880_v14 = vpop.permute.xlu1 %879 }
 0x5c8   :  { %v4529_v10 = vpop.eup %4528 }
 0x5c9   :  { %v723_v11 = vmul.f32 %v4529_v10, %v4525_v61  ;;  %v958_v16 = vpop.permute.xlu1 %957 }
 0x5cb   :  { %4173 = vmatmul.mubr.msk.f32.vlgmr.msra.gmra.mrb[4].mxu0 %vm217_vm2, %v723_v11 }
 0x5cc   :  { %4181 = vmatpush3.xpose.msk.msra.mxu0 %vm217_vm2, %v880_v14  ;;  %4182 = vmatprep.mubr.msk.f32.mxu0 %vm4746_vm1, %v4745_v8 }
 0x5cd   :  { %4190 = vmatprep.subr.mxu0 %v4745_v8 }
 0x5cf   :  { %4183 = vmatmul.mubr.msk.f32.vlgmr.msra.gmra.mrb[6].mxu0 %vm217_vm2, %v878_v15 }
 0x5d0   :  { %4192 = vmatprep.mubr.msk.f32.mxu0 %vm4746_vm1, %v4745_v8 }
 0x5fa   :  { %v720_v17 = vpop.xlane.xlu1 %719 }
 0x5fb   :  { %4530 = vrcp.f32 %v720_v17 }
 0x5fe   :  { %v956_v20 = vpop.permute.xlu1 %955 }
 0x605   :  { %v4531_v18 = vpop.eup %4530 }
 0x606   :  { %v724_v19 = vmul.f32 %v4531_v18, %v4527_v3 }
 0x608   :  { %4178 = vmatmul.mubr.msk.f32.vlgmr.msra.gmra.mrb[10].mxu1 %vm217_vm2, %v724_v19 }
 0x609   :  { %4186 = vmatpush3.xpose.msk.msra.mxu1 %vm217_vm2, %v958_v16  ;;  %4187 = vmatprep.mubr.msk.f32.mxu1 %vm4746_vm1, %v4745_v8 }
 0x60a   :  { %4195 = vmatprep.subr.mxu1 %v4745_v8 }
 0x60c   :  { %4188 = vmatmul.mubr.msk.f32.vlgmr.msra.gmra.mrb[12].mxu1 %vm217_vm2, %v956_v20 }
 0x60d   :  { %4197 = vmatprep.mubr.msk.f32.mxu1 %vm4746_vm1, %v4745_v8 }
 0x69e   :  { %v5036_v21 = vpop.f32.mrb[4].mxu0 }
 0x69f   :  { %v4174_v22 = vpop.f32.mrb[5].mxu0 }
 0x6a2   :  { %v951_v23 = vpop.f32.mrb[6].mxu0 }
 0x6a3   :  { %v1033_v24 = vmul.f32 0.35355338, %v951_v23  ;;  %v4184_v25 = vpop.f32.mrb[7].mxu0 }
 0x6a5   :  { %v1035_v26 = vsel %vm217_vm2, %v1033_v24, -inf }
 0x6a6   :  { %1036 = vmax.xlane.f32.xlu0 %v1035_v26 }
 0x6db   :  { %v5039_v27 = vpop.f32.mrb[10].mxu1 }
 0x6dc   :  { %v4179_v28 = vpop.f32.mrb[11].mxu1 }
 0x6dd   :  { %v1575_v28 = vld [vmem:[%s5466_s3 + $0x10] sm:$0xff] }
 0x6df   :  { %v1029_v29 = vpop.f32.mrb[12].mxu1 }
 0x6e0   :  { %v1034_v30 = vmul.f32 0.35355338, %v1029_v29  ;;  %v4189_v31 = vpop.f32.mrb[13].mxu1 }
 0x6e2   :  { %v1038_v32 = vsel %vm217_vm2, %v1034_v30, -inf }
 0x6e3   :  { %1039 = vmax.xlane.f32.xlu1 %v1038_v32 }
 0x6f4   :  { %1057 = vrot.lane.b32.xlu1 %v4944_v12, %s4754_s19 }
 0x6f8   :  { %1211 = vrot.lane.b32.xlu1 %v4944_v12, %s4755_s24 }
 0x6fc   :  { %1289 = vrot.lane.b32.xlu1 %v4948_v13, %s4755_s24 }
 0x700   :  { %1287 = vrot.lane.b32.xlu1 %v4948_v13, %s4756_s25 }
 0x733   :  { %v1037_v33 = vpop.xlane.xlu0 %1036 }
 0x734   :  { %v1041_v34 = vsub.f32 %v1033_v24, %v1037_v33 }
 0x736   :  { %v1043_v35 = vmul.f32 1.442695, %v1041_v34 }
 0x738   :  { %4532 = vpow2.f32 %v1043_v35 }
 0x742   :  { %v4533_v36 = vpop.eup %4532 }
 0x743   :  { %v1047_v37 = vsel %vm217_vm2, %v4533_v36, 0.0 }
 0x744   :  { %1048 = vadd.xlane.f32.xlu0 %v1047_v37 }
 0x75a   :  { %1133 = vrot.lane.b32.xlu0 %v4948_v13, %s4754_s19 }
 0x770   :  { %v1040_v38 = vpop.xlane.xlu1 %1039 }
 0x771   :  { %v1042_v39 = vsub.f32 %v1034_v30, %v1040_v38  ;;  %v1576_v30 = vld [vmem:[%s5466_s3 + $0x18] sm:$0xff] }
 0x772   :  { %v4416_v31 = vpack.c.bf16 %v1576_v30, %v1575_v28  ;;  %v3927_v28 = vld [vmem:[#allocation8] ss:$0 sm:$0xff] }
 0x773   :  { %v1045_v40 = vmul.f32 1.442695, %v1042_v39 }
 0x774   :  { %v1058_v41 = vpop.permute.xlu1 %1057 }
 0x775   :  { %4534 = vpow2.f32 %v1045_v40  ;;  %4191 = vmatpush3.msra.mxu0 %v1058_v41 }
 0x776   :  { %4200 = vmatprep.subr.mxu0 %v4745_v8 }
 0x778   :  { %v1212_v48 = vpop.permute.xlu1 %1211 }
 0x77c   :  { %v1290_v54 = vpop.permute.xlu1 %1289 }
 0x77f   :  { %v4535_v42 = vpop.eup %4534 }
 0x780   :  { %v1050_v43 = vsel %vm217_vm2, %v4535_v42, 0.0  ;;  %v1288_v56 = vpop.permute.xlu1 %1287 }
 0x781   :  { %1051 = vadd.xlane.f32.xlu0 %v1050_v43 }
 0x797   :  { %1209 = vrot.lane.b32.xlu0 %v4944_v12, %s4756_s25 }
 0x7d1   :  { %v1049_v44 = vpop.xlane.xlu0 %1048 }
 0x7d2   :  { %4536 = vrcp.f32 %v1049_v44 }
 0x7d5   :  { %v1134_v45 = vpop.permute.xlu0 %1133 }
 0x7d6   :  { %4196 = vmatpush3.msra.mxu1 %v1134_v45 }
 0x7d7   :  { %4205 = vmatprep.subr.mxu1 %v4745_v8 }
 0x7dc   :  { %v4537_v46 = vpop.eup %4536 }
 0x7dd   :  { %v1055_v47 = vmul.f32 %v4537_v46, %v4533_v36 }
 0x7df   :  { %4193 = vmatmul.mubr.msk.f32.vlgmr.msra.gmra.mrb[8].mxu0 %vm217_vm2, %v1055_v47 }
 0x7e0   :  { %4201 = vmatpush3.xpose.msk.msra.mxu0 %vm217_vm2, %v1212_v48  ;;  %4202 = vmatprep.mubr.msk.f32.mxu0 %vm4746_vm1, %v4745_v8 }
 0x7e1   :  { %4210 = vmatprep.subr.mxu0 %v4745_v8 }
 0x80e   :  { %v1052_v49 = vpop.xlane.xlu0 %1051 }
 0x80f   :  { %4538 = vrcp.f32 %v1052_v49 }
 0x812   :  { %v1210_v51 = vpop.permute.xlu0 %1209 }
 0x813   :  { %4203 = vmatmul.mubr.msk.f32.vlgmr.msra.gmra.mrb[10].mxu0 %vm217_vm2, %v1210_v51 }
 0x814   :  { %4212 = vmatprep.mubr.msk.f32.mxu0 %vm4746_vm1, %v4745_v8 }
 0x819   :  { %v4539_v53 = vpop.eup %4538 }
 0x81a   :  { %v1056_v55 = vmul.f32 %v4539_v53, %v4535_v42 }
 0x81c   :  { %4198 = vmatmul.mubr.msk.f32.vlgmr.msra.gmra.mrb[14].mxu1 %vm217_vm2, %v1056_v55 }
 0x81d   :  { %4206 = vmatpush3.xpose.msk.msra.mxu1 %vm217_vm2, %v1290_v54  ;;  %4207 = vmatprep.mubr.msk.f32.mxu1 %vm4746_vm1, %v4745_v8 }
 0x81e   :  { %4215 = vmatprep.subr.mxu1 %v4745_v8 }
 0x820   :  { %4208 = vmatmul.mubr.msk.f32.vlgmr.msra.gmra.mrb[16].mxu1 %vm217_vm2, %v1288_v56 }
 0x821   :  { %4217 = vmatprep.mubr.msk.f32.mxu1 %vm4746_vm1, %v4745_v8 }
 0x8b2   :  { %v1129_v57 = vpop.f32.mrb[8].mxu0 }
 0x8b3   :  { %v4194_v58 = vpop.f32.mrb[9].mxu0 }
 0x8e6   :  { %v1283_v59 = vpop.f32.mrb[10].mxu0 }
 0x8e7   :  { %v1365_v60 = vmul.f32 0.35355338, %v1283_v59  ;;  %v4204_v61 = vpop.f32.mrb[11].mxu0 }
 0x8e9   :  { %v1367_v62 = vsel %vm217_vm2, %v1365_v60, -inf }
 0x8ea   :  { %1368 = vmax.xlane.f32.xlu0 %v1367_v62 }
 0x8ef   :  { %v1205_v63 = vpop.f32.mrb[14].mxu1 }
 0x8f0   :  { %v4199_v0 = vpop.f32.mrb[15].mxu1 }
 0x8f3   :  { %v1361_v1 = vpop.f32.mrb[16].mxu1 }
 0x8f4   :  { %v1366_v2 = vmul.f32 0.35355338, %v1361_v1  ;;  %v4209_v3 = vpop.f32.mrb[17].mxu1 }
 0x8f6   :  { %v1370_v4 = vsel %vm217_vm2, %v1366_v2, -inf }
 0x8f7   :  { %1371 = vmax.xlane.f32.xlu1 %v1370_v4  ;;  %v1714_v4 = vld [vmem:[%s5470_s7 + $0x10] sm:$0xff] }
 0x908   :  { %1389 = vrot.lane.b32.xlu1 %v4944_v12, %s4757_s0 }
 0x90c   :  { %1543 = vrot.lane.b32.xlu1 %v5036_v21, %s5485_s18 }
 0x910   :  { %1545 = vrot.lane.b32.xlu1 %v5039_v27, %s5485_s18  ;;  %v1574_v27 = vld [vmem:[%s5466_s3 + $0x8] sm:$0xff] }
 0x914   :  { %1553 = vrot.lane.b32.xlu1 %v1205_v63, %s5483_s28 }
 0x977   :  { %v1369_v6 = vpop.xlane.xlu0 %1368 }
 0x978   :  { %v1373_v9 = vsub.f32 %v1365_v60, %v1369_v6  ;;  %v1715_v6 = vld [vmem:[%s5470_s7 + $0x18] sm:$0xff] }
 0x97a   :  { %v1375_v10 = vmul.f32 1.442695, %v1373_v9  ;;  %v4424_v9 = vpack.c.bf16 %v1715_v6, %v1714_v4 }
 0x97c   :  { %4540 = vpow2.f32 %v1375_v10  ;;  %v1806_v10 = vld [vmem:[%s5472_s9] sm:$0xff] }
 0x984   :  { %v1372_v11 = vpop.xlane.xlu1 %1371 }
 0x985   :  { %v1374_v14 = vsub.f32 %v1366_v2, %v1372_v11  ;;  %v1713_v2 = vld [vmem:[%s5470_s7 + $0x8] sm:$0xff] }
 0x986   :  { %v4541_v15 = vpop.eup %4540  ;;  %v1807_v11 = vld [vmem:[%s5472_s9 + $0x8] sm:$0xff] }
 0x987   :  { %v1377_v16 = vmul.f32 1.442695, %v1374_v14  ;;  %v1379_v17 = vsel %vm217_vm2, %v4541_v15, 0.0  ;;  %v1808_v14 = vld [vmem:[%s5472_s9 + $0x10] sm:$0xff] }
 0x988   :  { %v1390_v18 = vpop.permute.xlu1 %1389  ;;  %1380 = vadd.xlane.f32.xlu0 %v1379_v17 }
 0x989   :  { %4542 = vpow2.f32 %v1377_v16  ;;  %4211 = vmatpush3.msra.mxu0 %v1390_v18  ;;  %v1809_v16 = vld [vmem:[%s5472_s9 + $0x18] sm:$0xff]  ;;  %v1810_v18 = vld [vmem:[%s5472_s9 + $0x20] sm:$0xff] }
 0x98a   :  { %v4432_v17 = vpack.c.bf16 %v1809_v16, %v1808_v14  ;;  %v3934_v16 = vld [vmem:[%s5474_s11] ss:$0 sm:$0xff] }
 0x98c   :  { %v1544_v36 = vpop.permute.xlu1 %1543 }
 0x98d   :  { %v1565_v38 = vsel %vm217_vm2, %v4999_v50, %v1544_v36  ;;  %v3923_v50 = vld [vmem:[#allocation5] ss:$0 sm:$0xff]  ;;  %v1813_v36 = vld [vmem:[%s5472_s9 + $0x38] sm:$0xff] }
 0x990   :  { %v1546_v42 = vpop.permute.xlu1 %1545 }
 0x991   :  { %v1566_v44 = vsel %vm217_vm2, %v5001_v52, %v1546_v42 }
 0x993   :  { %v4543_v12 = vpop.eup %4542 }
 0x994   :  { %v1382_v19 = vsel %vm217_vm2, %v4543_v12, 0.0  ;;  %v1554_v43 = vpop.permute.xlu1 %1553 }
 0x995   :  { %1383 = vadd.xlane.f32.xlu0 %v1382_v19  ;;  %v1569_v45 = vsel %vm1567_vm4, %v1566_v44, %v1554_v43 }
 0x9ab   :  { %1465 = vrot.lane.b32.xlu0 %v4948_v13, %s4757_s0  ;;  %v1573_v13 = vld [vmem:[%s5466_s3] sm:$0xff] }
 0x9ac   :  { %v4412_v29 = vpack.c.bf16 %v1574_v27, %v1573_v13  ;;  %v3926_v13 = vld [vmem:[#allocation7] ss:$0 sm:$0xff] }
 0x9ae   :  { %4413 = vmatprep.subr.bf16.mxu0 %v4412_v29 }
 0x9af   :  { %1551 = vrot.lane.b32.xlu0 %v1129_v57, %s5483_s28 }
 0xa15   :  { %v1381_v20 = vpop.xlane.xlu0 %1380 }
 0xa16   :  { %4544 = vrcp.f32 %v1381_v20 }
 0xa20   :  { %v4545_v21 = vpop.eup %4544 }
 0xa21   :  { %v1387_v22 = vmul.f32 %v4545_v21, %v4541_v15  ;;  %v4428_v15 = vpack.c.bf16 %v1807_v11, %v1806_v10 }
 0xa22   :  { %v1384_v23 = vpop.xlane.xlu0 %1383 }
 0xa23   :  { %4546 = vrcp.f32 %v1384_v23  ;;  %4213 = vmatmul.mubr.msk.f32.vlgmr.msra.gmra.mrb[12].mxu0 %vm217_vm2, %v1387_v22 }
 0xa24   :  { %4415 = vmatpush3.bf16.msra.mxu0 %v4412_v29 }
 0xa25   :  { %4417 = vmatprep.subr.bf16.mxu0 %v4416_v31 }
 0xa26   :  { %v1466_v24 = vpop.permute.xlu0 %1465 }
 0xa27   :  { %4216 = vmatpush3.msra.mxu1 %v1466_v24 }
 0xa28   :  { %4419 = vmatpush3.bf16.msra.mxu0 %v4416_v31 }
 0xa29   :  { %4429 = vmatprep.subr.bf16.mxu0 %v4428_v15 }
 0xa2a   :  { %v1552_v37 = vpop.permute.xlu0 %1551 }
 0xa2b   :  { %v1568_v39 = vsel %vm1567_vm4, %v1565_v38, %v1552_v37  ;;  %v3928_v38 = vld [vmem:[#allocation10] ss:$0 sm:$0xff] }
 0xa2d   :  { %v4547_v25 = vpop.eup %4546 }
 0xa2e   :  { %v1388_v26 = vmul.f32 %v4547_v25, %v4543_v12  ;;  %v1811_v12 = vld [vmem:[%s5472_s9 + $0x28] sm:$0xff] }
 0xa2f   :  { %v4436_v19 = vpack.c.bf16 %v1811_v12, %v1810_v18 }
 0xa30   :  { %4218 = vmatmul.mubr.msk.f32.vlgmr.msra.gmra.mrb[18].mxu1 %vm217_vm2, %v1388_v26 }
 0xaf6   :  { %v1461_v32 = vpop.f32.mrb[12].mxu0 }
 0xaf7   :  { %1559 = vrot.lane.b32.xlu0 %v1461_v32, %s5481_s21  ;;  %v4214_v33 = vpop.f32.mrb[13].mxu0 }
 0xb03   :  { %v1537_v34 = vpop.f32.mrb[18].mxu1 }
 0xb04   :  { %1561 = vrot.lane.b32.xlu1 %v1537_v34, %s5481_s21  ;;  %v4219_v35 = vpop.f32.mrb[19].mxu1 }
 0xb05   :  { %v1812_v35 = vld [vmem:[%s5472_s9 + $0x30] sm:$0xff] }
 0xb06   :  { %v4440_v37 = vpack.c.bf16 %v1813_v36, %v1812_v35 }
 0xb69   :  { %v1560_v40 = vpop.permute.xlu0 %1559 }
 0xb6a   :  { %v1571_v41 = vsel %vm1570_vm3, %v1568_v39, %v1560_v40 }
 0xb6b   :  { %4228 = vmatprep.mubr.msk.f32.mxu0 %vm132_vm0, %v1571_v41 }
 0xb76   :  { %v1562_v46 = vpop.permute.xlu1 %1561 }
 0xb77   :  { %v1572_v47 = vsel %vm1570_vm3, %v1569_v45, %v1562_v46  ;;  %v3931_v45 = vld [vmem:[%s5473_s10] ss:$0 sm:$0xff] }
 0xb78   :  { %4229 = vmatmul.mubr.msk.f32.vlgmr.msra.gmra.mrb[14].mxu0 %vm132_vm0, %v1572_v47 }
 0xb79   :  { %4431 = vmatpush3.bf16.msra.mxu0 %v4428_v15 }
 0xb7a   :  { %4433 = vmatprep.subr.bf16.mxu0 %v4432_v17 }
 0xb7d   :  { %4435 = vmatpush3.bf16.msra.mxu0 %v4432_v17 }
 0xb7e   :  { %4437 = vmatprep.subr.bf16.mxu0 %v4436_v19 }
 0xb81   :  { %4439 = vmatpush3.bf16.msra.mxu0 %v4436_v19  ;;  %v3935_v19 = vld [vmem:[%s5475_s12] ss:$0 sm:$0xff] }
 0xb82   :  { %4441 = vmatprep.subr.bf16.mxu0 %v4440_v37 }
 0xb85   :  { %4443 = vmatpush3.bf16.msra.mxu0 %v4440_v37 }
 0xb86   :  { %4282 = vmatprep.subr.mxu0 %v4745_v8 }
 0xc4b   :  { %v4230_v48 = vpop.f32.mrb[14].mxu0 }
 0xc4c   :  { %v1662_v49 = vadd.f32 %v4230_v48, %v3923_v50  ;;  %v1656_v51 = vpop.f32.mrb[15].mxu0 }
 0xc4d   :  { %v1657_v53 = vadd.f32 %v3923_v50, %v1656_v51 }
 0xc4e   :  { %v1666_v54 = vadd.f32 %v1662_v49, %v4931_v7 }
 0xc4f   :  { %v1665_v55 = vadd.f32 %v1657_v53, %v4927_v5  ;;  %v1712_v5 = vld [vmem:[%s5470_s7] sm:$0xff] }
 0xc50   :  { %v1672_v56 = vsel %vm132_vm0, %v1666_v54, 0.0  ;;  %v4420_v3 = vpack.c.bf16 %v1713_v2, %v1712_v5  ;;  %v3938_v5 = vld [vmem:[%s5464_s1 + $0x30] sm:$0xff]  ;;  %v3939_v2 = vld [vmem:[%s5464_s1 + $0x38] sm:$0xff] }
 0xc51   :  { %1673 = vadd.xlane.f32.xlu1 %v1672_v56  ;;  %v1669_v52 = vsel %vm132_vm0, %v1665_v55, 0.0 }
 0xc52   :  { %1670 = vadd.xlane.f32.xlu0 %v1669_v52  ;;  %4421 = vmatprep.subr.bf16.mxu1 %v4420_v3 }
 0xc53   :  { %4423 = vmatpush3.bf16.msra.mxu1 %v4420_v3  ;;  %v4448_v3 = vpack.c.bf16 %v3939_v2, %v3938_v5 }
 0xc54   :  { %4425 = vmatprep.subr.bf16.mxu1 %v4424_v9 }
 0xc57   :  { %4427 = vmatpush3.bf16.msra.mxu1 %v4424_v9 }
 0xcde   :  { %v1674_v57 = vpop.xlane.xlu1 %1673 }
 0xcdf   :  { %v1677_v58 = vmul.f32 0.03125, %v1674_v57  ;;  %v1671_v59 = vpop.xlane.xlu0 %1670 }
 0xce0   :  { %v1676_v60 = vmul.f32 0.03125, %v1671_v59 }
 0xce1   :  { %v1679_v61 = vsub.f32 %v1666_v54, %v1677_v58 }
 0xce2   :  { %v1678_v62 = vsub.f32 %v1665_v55, %v1676_v60 }
 0xce3   :  { %v1681_v1 = vmul.f32 %v1679_v61, %v1679_v61 }
 0xce4   :  { %v1680_v63 = vmul.f32 %v1678_v62, %v1678_v62 }
 0xce5   :  { %v1685_v7 = vsel %vm132_vm0, %v1681_v1, 0.0  ;;  %v3937_v1 = vld [vmem:[%s5464_s1 + $0x28] sm:$0xff] }
 0xce6   :  { %v1682_v0 = vsel %vm132_vm0, %v1680_v63, 0.0 }
 0xce7   :  { %1683 = vadd.xlane.f32.xlu0 %v1682_v0  ;;  %v3936_v0 = vld [vmem:[%s5464_s1 + $0x20] sm:$0xff] }
 0xceb   :  { %1686 = vadd.xlane.f32.xlu0 %v1685_v7  ;;  %v4444_v7 = vpack.c.bf16 %v3937_v1, %v3936_v0 }
 0xced   :  { %4445 = vmatprep.subr.bf16.mxu1 %v4444_v7 }
 0xd74   :  { %v1684_v20 = vpop.xlane.xlu0 %1683 }
 0xd75   :  { %v1688_v21 = vmul.f32 0.03125, %v1684_v20 }
 0xd77   :  { %v1690_v22 = vadd.f32 1e-05, %v1688_v21 }
 0xd78   :  { %v1687_v23 = vpop.xlane.xlu0 %1686 }
 0xd79   :  { %4548 = vrsqrt.f32 %v1690_v22  ;;  %v1689_v24 = vmul.f32 0.03125, %v1687_v23 }
 0xd7b   :  { %v1691_v25 = vadd.f32 1e-05, %v1689_v24  ;;  %v3941_v24 = vld [vmem:[%s5465_s2 + $0x1] ss:$0 sm:$0xff]  ;;  %s5488_s2 = smov 8  }
 0xd7d   :  { %4550 = vrsqrt.f32 %v1691_v25 }
 0xd83   :  { %v4549_v26 = vpop.eup %4548 }
 0xd84   :  { %v1694_v27 = vmul.f32 %v4549_v26, %v1678_v62 }
 0xd86   :  { %v1702_v29 = vmul.f32 %v3926_v13, %v1694_v27 }
 0xd87   :  { %v4551_v30 = vpop.eup %4550 }
 0xd88   :  { %v1695_v31 = vmul.f32 %v4551_v30, %v1679_v61  ;;  %v1710_v32 = vadd.f32 %v3927_v28, %v1702_v29 }
 0xd8a   :  { %v1703_v33 = vmul.f32 %v3926_v13, %v1695_v31  ;;  %4239 = vmatprep.mubr.msk.f32.mxu1 %vm132_vm0, %v1710_v32 }
 0xd8c   :  { %v1711_v34 = vadd.f32 %v3927_v28, %v1703_v33 }
 0xd8e   :  { %4240 = vmatmul.mubr.msk.f32.vlgmr.msra.gmra.mrb[20].mxu1 %vm132_vm0, %v1711_v34 }
 0xd8f   :  { %4447 = vmatpush3.bf16.msra.mxu1 %v4444_v7 }
 0xd90   :  { %4449 = vmatprep.subr.bf16.mxu1 %v4448_v3 }
 0xd93   :  { %4451 = vmatpush3.bf16.msra.mxu1 %v4448_v3 }
 0xd94   :  { %4272 = vmatprep.subr.mxu1 %v4745_v8 }
 0xe61   :  { %v4241_v39 = vpop.f32.mrb[20].mxu1 }
 0xe62   :  { %v1801_v40 = vadd.f32 %v4241_v39, %v3928_v38  ;;  %v1795_v41 = vpop.f32.mrb[21].mxu1 }
 0xe63   :  { %v1796_v42 = vadd.f32 %v3928_v38, %v1795_v41 }
 0xe64   :  { %v1805_v44 = vmax.f32 %v1801_v40, 0.0 }
 0xe65   :  { %v1804_v43 = vmax.f32 %v1796_v42, 0.0 }
 0xe67   :  { %4258 = vmatprep.mubr.msk.f32.mxu0 %vm1821_vm5, %v1804_v43 }
 0xe68   :  { %4259 = vmatmul.mubr.msk.f32.vlgmr.msra.gmra.mrb[16].mxu0 %vm1821_vm5, %v1805_v44 }
 0xe69   :  { %4284 = vmatprep.mubr.msk.f32.mxu0 %vm4746_vm1, %v4745_v8 }
 0xf3b   :  { %v4260_v46 = vpop.f32.mrb[16].mxu0 }
 0xf3c   :  { %v1900_v47 = vadd.f32 %v4260_v46, %v3931_v45  ;;  %v1894_v50 = vpop.f32.mrb[17].mxu0 }
 0xf3d   :  { %v1895_v48 = vadd.f32 %v3931_v45, %v1894_v50 }
 0xf3e   :  { %v1904_v49 = vadd.f32 %v1900_v47, %v1711_v34 }
 0xf3f   :  { %v1903_v51 = vadd.f32 %v1895_v48, %v1710_v32 }
 0xf40   :  { %v1910_v53 = vsel %vm132_vm0, %v1904_v49, 0.0 }
 0xf41   :  { %1911 = vadd.xlane.f32.xlu0 %v1910_v53  ;;  %v1907_v54 = vsel %vm132_vm0, %v1903_v51, 0.0 }
 0xf42   :  { %1908 = vadd.xlane.f32.xlu1 %v1907_v54 }
 0xfce   :  { %v1912_v55 = vpop.xlane.xlu0 %1911 }
 0xfcf   :  { %v1914_v56 = vmul.f32 0.03125, %v1912_v55  ;;  %v1909_v52 = vpop.xlane.xlu1 %1908 }
 0xfd0   :  { %v1913_v57 = vmul.f32 0.03125, %v1909_v52 }
 0xfd1   :  { %v1916_v58 = vsub.f32 %v1904_v49, %v1914_v56 }
 0xfd2   :  { %v1915_v59 = vsub.f32 %v1903_v51, %v1913_v57 }
 0xfd3   :  { %v1918_v60 = vmul.f32 %v1916_v58, %v1916_v58 }
 0xfd4   :  { %v1917_v61 = vmul.f32 %v1915_v59, %v1915_v59 }
 0xfd5   :  { %v1922_v62 = vsel %vm132_vm0, %v1918_v60, 0.0 }
 0xfd6   :  { %1923 = vadd.xlane.f32.xlu0 %v1922_v62  ;;  %v1919_v63 = vsel %vm132_vm0, %v1917_v61, 0.0 }
 0xfd7   :  { %1920 = vadd.xlane.f32.xlu1 %v1919_v63 }
0x1063   :  { %v1924_v4 = vpop.xlane.xlu0 %1923 }
0x1064   :  { %v1926_v6 = vmul.f32 0.03125, %v1924_v4  ;;  %v1921_v9 = vpop.xlane.xlu1 %1920 }
0x1065   :  { %v1925_v10 = vmul.f32 0.03125, %v1921_v9 }
0x1066   :  { %v1928_v11 = vadd.f32 1e-05, %v1926_v6 }
0x1067   :  { %v1927_v14 = vadd.f32 1e-05, %v1925_v10 }
0x1068   :  { %4552 = vrsqrt.f32 %v1928_v11 }
0x1069   :  { %4554 = vrsqrt.f32 %v1927_v14 }
0x1072   :  { %v4553_v15 = vpop.eup %4552 }
0x1073   :  { %v4555_v17 = vpop.eup %4554  ;;  %v1932_v18 = vmul.f32 %v4553_v15, %v1916_v58 }
0x1074   :  { %v1931_v12 = vmul.f32 %v4555_v17, %v1915_v59 }
0x1075   :  { %v1940_v20 = vmul.f32 %v3934_v16, %v1932_v18 }
0x1076   :  { %v1939_v21 = vmul.f32 %v3934_v16, %v1931_v12 }
0x1077   :  { %v5191_v23 = vadd.f32 %v3935_v19, %v1940_v20 }
0x1078   :  { %v5189_v22 = vadd.f32 %v3935_v19, %v1939_v21 }
0x107a   :  { %4269 = vmatprep.mubr.msk.f32.mxu1 %vm132_vm0, %v5189_v22 }
0x107b   :  { %4270 = vmatmul.mubr.msk.f32.vlgmr.msra.gmra.mrb[22].mxu1 %vm132_vm0, %v5191_v23 }
0x107c   :  { %4274 = vmatprep.mubr.msk.f32.mxu1 %vm4746_vm1, %v4745_v8 }
0x114e   :  { %v4271_v25 = vpop.f32.mrb[22].mxu1 }
0x114f   :  { %v5202_v26 = vadd.f32 %v4271_v25, %v3941_v24  ;;  %v2034_v13 = vpop.f32.mrb[23].mxu1 }
0x1150   :  { %v5204_v27 = vadd.f32 %v3941_v24, %v2034_v13 }
0x1151   :  { %2121 = vrot.lane.b32.xlu0 %v5202_v26, %s4747_s30 }
0x1152   :  { %2044 = vrot.lane.b32.xlu1 %v5204_v27, %s4747_s30  ;;  %s5489_s30 = smov 16  }
0x11c3   :  { %v2122_v29 = vpop.permute.xlu0 %2121 }
0x11c4   :  { %v2045_v28 = vpop.permute.xlu1 %2044 }
0x11c5   :  { %4273 = vmatpush3.xpose.msk.msra.mxu1 %vm217_vm2, %v2045_v28 }
0x11c6   :  { %4277 = vmatprep.subr.mxu1 %v4745_v8 }
0x11c8   :  { %4275 = vmatmul.mubr.msk.f32.vlgmr.msra.gmra.mrb[24].mxu1 %vm217_vm2, %v5204_v27 }
0x11c9   :  { %4278 = vmatpush3.xpose.msk.msra.mxu1 %vm217_vm2, %v2122_v29  ;;  %4279 = vmatprep.mubr.msk.f32.mxu1 %vm4746_vm1, %v4745_v8 }
0x11ca   :  { %4287 = vmatprep.subr.mxu1 %v4745_v8 }
0x11cc   :  { %4280 = vmatmul.mubr.msk.f32.vlgmr.msra.gmra.mrb[26].mxu1 %vm217_vm2, %v5202_v26 }
0x11cd   :  { %4289 = vmatprep.mubr.msk.f32.mxu1 %vm4746_vm1, %v4745_v8 }
0x129b   :  { %v2116_v30 = vpop.f32.mrb[24].mxu1 }
0x129c   :  { %v2197_v31 = vmul.f32 0.35355338, %v2116_v30  ;;  %v4276_v32 = vpop.f32.mrb[25].mxu1 }
0x129e   :  { %v2199_v33 = vsel %vm217_vm2, %v2197_v31, -inf }
0x129f   :  { %2200 = vmax.xlane.f32.xlu1 %v2199_v33  ;;  %v2193_v34 = vpop.f32.mrb[26].mxu1 }
0x12a0   :  { %v2198_v35 = vmul.f32 0.35355338, %v2193_v34  ;;  %v4281_v36 = vpop.f32.mrb[27].mxu1 }
0x12a2   :  { %v2202_v37 = vsel %vm217_vm2, %v2198_v35, -inf }
0x12a3   :  { %2203 = vmax.xlane.f32.xlu0 %v2202_v37 }
0x12b0   :  { %2221 = vrot.lane.b32.xlu1 %v5204_v27, %s4748_s15 }
0x12b4   :  { %2375 = vrot.lane.b32.xlu1 %v5204_v27, %s4749_s17 }
0x12b8   :  { %2453 = vrot.lane.b32.xlu1 %v5202_v26, %s4749_s17 }
0x12b9   :  { %2297 = vrot.lane.b32.xlu0 %v5202_v26, %s4748_s15 }
0x132c   :  { %v2201_v38 = vpop.xlane.xlu1 %2200 }
0x132d   :  { %v2205_v39 = vsub.f32 %v2197_v31, %v2201_v38 }
0x132f   :  { %v2207_v40 = vmul.f32 1.442695, %v2205_v39 }
0x1330   :  { %v2222_v41 = vpop.permute.xlu1 %2221  ;;  %v2204_v42 = vpop.xlane.xlu0 %2203 }
0x1331   :  { %4556 = vpow2.f32 %v2207_v40  ;;  %v2206_v43 = vsub.f32 %v2198_v35, %v2204_v42  ;;  %4283 = vmatpush3.msra.mxu0 %v2222_v41 }
0x1332   :  { %4292 = vmatprep.subr.mxu0 %v4745_v8 }
0x1333   :  { %v2209_v44 = vmul.f32 1.442695, %v2206_v43 }
0x1334   :  { %v2298_v45 = vpop.permute.xlu0 %2297  ;;  %v2376_v49 = vpop.permute.xlu1 %2375 }
0x1335   :  { %4558 = vpow2.f32 %v2209_v44  ;;  %4288 = vmatpush3.msra.mxu1 %v2298_v45 }
0x1336   :  { %4297 = vmatprep.subr.mxu1 %v4745_v8 }
0x1338   :  { %v2454_v51 = vpop.permute.xlu1 %2453 }
0x133b   :  { %v4557_v46 = vpop.eup %4556 }
0x133c   :  { %v2211_v47 = vsel %vm217_vm2, %v4557_v46, 0.0 }
0x133d   :  { %2212 = vadd.xlane.f32.xlu1 %v2211_v47 }
0x133f   :  { %v4559_v50 = vpop.eup %4558 }
0x1340   :  { %v2214_v48 = vsel %vm217_vm2, %v4559_v50, 0.0 }
0x1341   :  { %2215 = vadd.xlane.f32.xlu0 %v2214_v48 }
0x134e   :  { %2451 = vrot.lane.b32.xlu1 %v5202_v26, %s4750_s20 }
0x1357   :  { %2373 = vrot.lane.b32.xlu0 %v5204_v27, %s4750_s20 }
0x13ca   :  { %v2213_v53 = vpop.xlane.xlu1 %2212 }
0x13cb   :  { %4560 = vrcp.f32 %v2213_v53 }
0x13ce   :  { %v2216_v54 = vpop.xlane.xlu0 %2215  ;;  %v2452_v59 = vpop.permute.xlu1 %2451 }
0x13cf   :  { %4562 = vrcp.f32 %v2216_v54 }
0x13d2   :  { %v2374_v58 = vpop.permute.xlu0 %2373 }
0x13d5   :  { %v4561_v55 = vpop.eup %4560 }
0x13d6   :  { %v2219_v56 = vmul.f32 %v4561_v55, %v4557_v46 }
0x13d8   :  { %4285 = vmatmul.mubr.msk.f32.vlgmr.msra.gmra.mrb[18].mxu0 %vm217_vm2, %v2219_v56 }
0x13d9   :  { %v4563_v52 = vpop.eup %4562  ;;  %4293 = vmatpush3.xpose.msk.msra.mxu0 %vm217_vm2, %v2376_v49  ;;  %4294 = vmatprep.mubr.msk.f32.mxu0 %vm4746_vm1, %v4745_v8 }
0x13da   :  { %v2220_v57 = vmul.f32 %v4563_v52, %v4559_v50  ;;  %4302 = vmatprep.subr.mxu0 %v4745_v8 }
0x13dc   :  { %4290 = vmatmul.mubr.msk.f32.vlgmr.msra.gmra.mrb[28].mxu1 %vm217_vm2, %v2220_v57  ;;  %4295 = vmatmul.mubr.msk.f32.vlgmr.msra.gmra.mrb[20].mxu0 %vm217_vm2, %v2374_v58 }
0x13dd   :  { %4298 = vmatpush3.xpose.msk.msra.mxu1 %vm217_vm2, %v2454_v51  ;;  %4299 = vmatprep.mubr.msk.f32.mxu1 %vm4746_vm1, %v4745_v8 }
0x13de   :  { %4307 = vmatprep.subr.mxu1 %v4745_v8  ;;  %4304 = vmatprep.mubr.msk.f32.mxu0 %vm4746_vm1, %v4745_v8 }
0x13e0   :  { %4300 = vmatmul.mubr.msk.f32.vlgmr.msra.gmra.mrb[30].mxu1 %vm217_vm2, %v2452_v59 }
0x13e1   :  { %4309 = vmatprep.mubr.msk.f32.mxu1 %vm4746_vm1, %v4745_v8 }
0x14ab   :  { %v5256_v60 = vpop.f32.mrb[18].mxu0 }
0x14ac   :  { %v4286_v61 = vpop.f32.mrb[19].mxu0 }
0x14af   :  { %v5258_v62 = vpop.f32.mrb[28].mxu1  ;;  %v2447_v63 = vpop.f32.mrb[20].mxu0 }
0x14b0   :  { %v2529_v0 = vmul.f32 0.35355338, %v2447_v63  ;;  %v4291_v1 = vpop.f32.mrb[29].mxu1  ;;  %v4296_v7 = vpop.f32.mrb[21].mxu0 }
0x14b2   :  { %v2531_v5 = vsel %vm217_vm2, %v2529_v0, -inf }
0x14b3   :  { %2532 = vmax.xlane.f32.xlu0 %v2531_v5  ;;  %v2525_v2 = vpop.f32.mrb[30].mxu1 }
0x14b4   :  { %v2530_v3 = vmul.f32 0.35355338, %v2525_v2  ;;  %v4301_v4 = vpop.f32.mrb[31].mxu1 }
0x14b6   :  { %v2534_v6 = vsel %vm217_vm2, %v2530_v3, -inf }
0x14b7   :  { %2535 = vmax.xlane.f32.xlu1 %v2534_v6 }
0x14c8   :  { %2553 = vrot.lane.b32.xlu1 %v5204_v27, %s4751_s22 }
0x14c9   :  { %2629 = vrot.lane.b32.xlu0 %v5202_v26, %s4751_s22 }
0x14cc   :  { %2707 = vrot.lane.b32.xlu1 %v5204_v27, %s4753_s5 }
0x14d0   :  { %2785 = vrot.lane.b32.xlu1 %v5202_v26, %s4753_s5 }
0x14d4   :  { %2783 = vrot.lane.b32.xlu1 %v5202_v26, %s4752_s23 }
0x1540   :  { %v2533_v9 = vpop.xlane.xlu0 %2532 }
0x1541   :  { %v2537_v10 = vsub.f32 %v2529_v0, %v2533_v9 }
0x1543   :  { %v2539_v11 = vmul.f32 1.442695, %v2537_v10 }
0x1544   :  { %v2630_v14 = vpop.permute.xlu0 %2629  ;;  %v2536_v15 = vpop.xlane.xlu1 %2535 }
0x1545   :  { %4564 = vpow2.f32 %v2539_v11  ;;  %v2538_v16 = vsub.f32 %v2530_v3, %v2536_v15  ;;  %4308 = vmatpush3.msra.mxu1 %v2630_v14 }
0x1546   :  { %4317 = vmatprep.subr.mxu1 %v4745_v8 }
0x1547   :  { %v2541_v17 = vmul.f32 1.442695, %v2538_v16 }
0x1548   :  { %v2554_v18 = vpop.permute.xlu1 %2553 }
0x1549   :  { %4566 = vpow2.f32 %v2541_v17  ;;  %4303 = vmatpush3.msra.mxu0 %v2554_v18 }
0x154a   :  { %4312 = vmatprep.subr.mxu0 %v4745_v8 }
0x154c   :  { %v2708_v13 = vpop.permute.xlu1 %2707 }
0x154f   :  { %v4565_v12 = vpop.eup %4564 }
0x1550   :  { %v2543_v19 = vsel %vm217_vm2, %v4565_v12, 0.0  ;;  %v2786_v31 = vpop.permute.xlu1 %2785 }
0x1551   :  { %2544 = vadd.xlane.f32.xlu0 %v2543_v19 }
0x1553   :  { %v4567_v20 = vpop.eup %4566 }
0x1554   :  { %v2546_v21 = vsel %vm217_vm2, %v4567_v20, 0.0  ;;  %v2784_v34 = vpop.permute.xlu1 %2783 }
0x1555   :  { %2547 = vadd.xlane.f32.xlu0 %v2546_v21 }
0x156b   :  { %2705 = vrot.lane.b32.xlu0 %v5204_v27, %s4752_s23 }
0x15de   :  { %v2545_v24 = vpop.xlane.xlu0 %2544 }
0x15df   :  { %4568 = vrcp.f32 %v2545_v24 }
0x15e2   :  { %v2548_v25 = vpop.xlane.xlu0 %2547 }
0x15e3   :  { %4570 = vrcp.f32 %v2548_v25 }
0x15e6   :  { %v2706_v33 = vpop.permute.xlu0 %2705 }
0x15e9   :  { %v4569_v28 = vpop.eup %4568 }
0x15ea   :  { %v2551_v29 = vmul.f32 %v4569_v28, %v4565_v12 }
0x15ec   :  { %4305 = vmatmul.mubr.msk.f32.vlgmr.msra.gmra.mrb[22].mxu0 %vm217_vm2, %v2551_v29 }
0x15ed   :  { %v4571_v30 = vpop.eup %4570  ;;  %4313 = vmatpush3.xpose.msk.msra.mxu0 %vm217_vm2, %v2708_v13  ;;  %4314 = vmatprep.mubr.msk.f32.mxu0 %vm4746_vm1, %v4745_v8 }
0x15ee   :  { %v2552_v32 = vmul.f32 %v4571_v30, %v4567_v20  ;;  %4322 = vmatprep.subr.mxu0 %v4745_v8 }
0x15f0   :  { %4310 = vmatmul.mubr.msk.f32.vlgmr.msra.gmra.mrb[32].mxu1 %vm217_vm2, %v2552_v32  ;;  %4315 = vmatmul.mubr.msk.f32.vlgmr.msra.gmra.mrb[24].mxu0 %vm217_vm2, %v2706_v33 }
0x15f1   :  { %4318 = vmatpush3.xpose.msk.msra.mxu1 %vm217_vm2, %v2786_v31  ;;  %4319 = vmatprep.mubr.msk.f32.mxu1 %vm4746_vm1, %v4745_v8 }
0x15f2   :  { %4327 = vmatprep.subr.mxu1 %v4745_v8  ;;  %4324 = vmatprep.mubr.msk.f32.mxu0 %vm4746_vm1, %v4745_v8 }
0x15f4   :  { %4320 = vmatmul.mubr.msk.f32.vlgmr.msra.gmra.mrb[34].mxu1 %vm217_vm2, %v2784_v34 }
0x15f5   :  { %4329 = vmatprep.mubr.msk.f32.mxu1 %vm4746_vm1, %v4745_v8 }
0x16bf   :  { %v5294_v35 = vpop.f32.mrb[22].mxu0 }
0x16c0   :  { %v4306_v36 = vpop.f32.mrb[23].mxu0 }
0x16c3   :  { %v5296_v37 = vpop.f32.mrb[32].mxu1  ;;  %v2779_v38 = vpop.f32.mrb[24].mxu0 }
0x16c4   :  { %v2861_v39 = vmul.f32 0.35355338, %v2779_v38  ;;  %v4311_v40 = vpop.f32.mrb[33].mxu1  ;;  %v4316_v41 = vpop.f32.mrb[25].mxu0 }
0x16c5   :  { %v3969_v40 = vld [vmem:[%s5466_s3 + $0x28] sm:$0xff] }
0x16c6   :  { %v2863_v42 = vsel %vm217_vm2, %v2861_v39, -inf }
0x16c7   :  { %2864 = vmax.xlane.f32.xlu0 %v2863_v42  ;;  %v2857_v43 = vpop.f32.mrb[34].mxu1  ;;  %v3970_v42 = vld [vmem:[%s5466_s3 + $0x30] sm:$0xff] }
0x16c8   :  { %v2862_v44 = vmul.f32 0.35355338, %v2857_v43  ;;  %v4321_v45 = vpop.f32.mrb[35].mxu1  ;;  %v3971_v43 = vld [vmem:[%s5466_s3 + $0x38] sm:$0xff] }
0x16ca   :  { %v2866_v46 = vsel %vm217_vm2, %v2862_v44, -inf }
0x16cb   :  { %2867 = vmax.xlane.f32.xlu1 %v2866_v46 }
0x16dc   :  { %2885 = vrot.lane.b32.xlu1 %v5204_v27, %s4754_s19 }
0x16dd   :  { %2961 = vrot.lane.b32.xlu0 %v5202_v26, %s4754_s19 }
0x16e0   :  { %3039 = vrot.lane.b32.xlu1 %v5204_v27, %s4755_s24 }
0x16e4   :  { %3117 = vrot.lane.b32.xlu1 %v5202_v26, %s4755_s24 }
0x16e8   :  { %3115 = vrot.lane.b32.xlu1 %v5202_v26, %s4756_s25 }
0x1754   :  { %v2865_v47 = vpop.xlane.xlu0 %2864 }
0x1755   :  { %v2869_v50 = vsub.f32 %v2861_v39, %v2865_v47 }
0x1757   :  { %v2871_v48 = vmul.f32 1.442695, %v2869_v50 }
0x1758   :  { %v2962_v49 = vpop.permute.xlu0 %2961  ;;  %v2868_v51 = vpop.xlane.xlu1 %2867 }
0x1759   :  { %4572 = vpow2.f32 %v2871_v48  ;;  %v2870_v53 = vsub.f32 %v2862_v44, %v2868_v51  ;;  %4328 = vmatpush3.msra.mxu1 %v2962_v49  ;;  %v4456_v44 = vpack.c.bf16 %v3971_v43, %v3970_v42 }
0x175a   :  { %4337 = vmatprep.subr.mxu1 %v4745_v8 }
0x175b   :  { %v2873_v54 = vmul.f32 1.442695, %v2870_v53 }
0x175c   :  { %v2886_v55 = vpop.permute.xlu1 %2885 }
0x175d   :  { %4574 = vpow2.f32 %v2873_v54  ;;  %4323 = vmatpush3.msra.mxu0 %v2886_v55 }
0x175e   :  { %4332 = vmatprep.subr.mxu0 %v4745_v8 }
0x1760   :  { %v3040_v63 = vpop.permute.xlu1 %3039 }
0x1763   :  { %v4573_v56 = vpop.eup %4572 }
0x1764   :  { %v2875_v52 = vsel %vm217_vm2, %v4573_v56, 0.0  ;;  %v3118_v5 = vpop.permute.xlu1 %3117 }
0x1765   :  { %2876 = vadd.xlane.f32.xlu0 %v2875_v52 }
0x1767   :  { %v4575_v57 = vpop.eup %4574 }
0x1768   :  { %v2878_v58 = vsel %vm217_vm2, %v4575_v57, 0.0  ;;  %v3116_v4 = vpop.permute.xlu1 %3115 }
0x1769   :  { %2879 = vadd.xlane.f32.xlu0 %v2878_v58 }
0x177f   :  { %3037 = vrot.lane.b32.xlu0 %v5204_v27, %s4756_s25  ;;  %s5490_s25 = smov 24  }
0x17f2   :  { %v2877_v59 = vpop.xlane.xlu0 %2876 }
0x17f3   :  { %4576 = vrcp.f32 %v2877_v59 }
0x17f6   :  { %v2880_v61 = vpop.xlane.xlu0 %2879 }
0x17f7   :  { %4578 = vrcp.f32 %v2880_v61 }
0x17fa   :  { %v3038_v3 = vpop.permute.xlu0 %3037 }
0x17fd   :  { %v4577_v0 = vpop.eup %4576 }
0x17fe   :  { %v2883_v1 = vmul.f32 %v4577_v0, %v4573_v56 }
0x1800   :  { %4325 = vmatmul.mubr.msk.f32.vlgmr.msra.gmra.mrb[26].mxu0 %vm217_vm2, %v2883_v1 }
0x1801   :  { %v4579_v7 = vpop.eup %4578  ;;  %4333 = vmatpush3.xpose.msk.msra.mxu0 %vm217_vm2, %v3040_v63  ;;  %4334 = vmatprep.mubr.msk.f32.mxu0 %vm4746_vm1, %v4745_v8  ;;  %v3972_v63 = vld [vmem:[#allocation5 + $0x1] ss:$0 sm:$0xff] }
0x1802   :  { %v2884_v2 = vmul.f32 %v4579_v7, %v4575_v57  ;;  %4342 = vmatprep.subr.mxu0 %v4745_v8 }
0x1804   :  { %4330 = vmatmul.mubr.msk.f32.vlgmr.msra.gmra.mrb[36].mxu1 %vm217_vm2, %v2884_v2  ;;  %4335 = vmatmul.mubr.msk.f32.vlgmr.msra.gmra.mrb[28].mxu0 %vm217_vm2, %v3038_v3 }
0x1805   :  { %4338 = vmatpush3.xpose.msk.msra.mxu1 %vm217_vm2, %v3118_v5  ;;  %4339 = vmatprep.mubr.msk.f32.mxu1 %vm4746_vm1, %v4745_v8 }
0x1806   :  { %4347 = vmatprep.subr.mxu1 %v4745_v8  ;;  %4344 = vmatprep.mubr.msk.f32.mxu0 %vm4746_vm1, %v4745_v8 }
0x1808   :  { %4340 = vmatmul.mubr.msk.f32.vlgmr.msra.gmra.mrb[38].mxu1 %vm217_vm2, %v3116_v4 }
0x1809   :  { %4349 = vmatprep.mubr.msk.f32.mxu1 %vm4746_vm1, %v4745_v8 }
0x18d3   :  { %v2957_v6 = vpop.f32.mrb[26].mxu0 }
0x18d4   :  { %v4326_v9 = vpop.f32.mrb[27].mxu0 }
0x18d7   :  { %v3033_v10 = vpop.f32.mrb[36].mxu1  ;;  %v3111_v11 = vpop.f32.mrb[28].mxu0 }
0x18d8   :  { %v3193_v14 = vmul.f32 0.35355338, %v3111_v11  ;;  %v4331_v15 = vpop.f32.mrb[37].mxu1  ;;  %v4336_v16 = vpop.f32.mrb[29].mxu0 }
0x18da   :  { %v3195_v17 = vsel %vm217_vm2, %v3193_v14, -inf }
0x18db   :  { %3196 = vmax.xlane.f32.xlu0 %v3195_v17  ;;  %v3189_v18 = vpop.f32.mrb[38].mxu1 }
0x18dc   :  { %v3194_v12 = vmul.f32 0.35355338, %v3189_v18  ;;  %v4341_v19 = vpop.f32.mrb[39].mxu1  ;;  %v3978_v18 = vld [vmem:[%s5470_s7 + $0x28] sm:$0xff] }
0x18dd   :  { %v3979_v19 = vld [vmem:[%s5470_s7 + $0x30] sm:$0xff] }
0x18de   :  { %v3198_v20 = vsel %vm217_vm2, %v3194_v12, -inf }
0x18df   :  { %3199 = vmax.xlane.f32.xlu1 %v3198_v20  ;;  %v3980_v20 = vld [vmem:[%s5470_s7 + $0x38] sm:$0xff] }
0x18f0   :  { %3217 = vrot.lane.b32.xlu1 %v5204_v27, %s4757_s0 }
0x18f4   :  { %3371 = vrot.lane.b32.xlu1 %v5294_v35, %s5488_s2 }
0x18f8   :  { %3373 = vrot.lane.b32.xlu1 %v5296_v37, %s5488_s2 }
0x18fc   :  { %3381 = vrot.lane.b32.xlu1 %v3033_v10, %s5489_s30 }
0x1968   :  { %v3197_v8 = vpop.xlane.xlu0 %3196 }
0x1969   :  { %v3201_v21 = vsub.f32 %v3193_v14, %v3197_v8  ;;  %v4464_v8 = vpack.c.bf16 %v3980_v20, %v3979_v19 }
0x196b   :  { %v3203_v24 = vmul.f32 1.442695, %v3201_v21  ;;  %v3984_v21 = vld [vmem:[%s5472_s9 + $0x40] sm:$0xff] }
0x196c   :  { %v3200_v25 = vpop.xlane.xlu1 %3199 }
0x196d   :  { %4580 = vpow2.f32 %v3203_v24  ;;  %v3202_v13 = vsub.f32 %v3194_v12, %v3200_v25  ;;  %v3985_v24 = vld [vmem:[%s5472_s9 + $0x48] sm:$0xff]  ;;  %v3986_v25 = vld [vmem:[%s5472_s9 + $0x50] sm:$0xff] }
0x196f   :  { %v3205_v28 = vmul.f32 1.442695, %v3202_v13  ;;  %v4468_v13 = vpack.c.bf16 %v3985_v24, %v3984_v21 }
0x1970   :  { %v3218_v29 = vpop.permute.xlu1 %3217 }
0x1971   :  { %4582 = vpow2.f32 %v3205_v28  ;;  %4343 = vmatpush3.msra.mxu0 %v3218_v29  ;;  %v3987_v28 = vld [vmem:[%s5472_s9 + $0x58] sm:$0xff] }
0x1972   :  { %v4472_v29 = vpack.c.bf16 %v3987_v28, %v3986_v25 }
0x1974   :  { %v3372_v48 = vpop.permute.xlu1 %3371 }
0x1975   :  { %v3393_v53 = vsel %vm217_vm2, %v5256_v60, %v3372_v48 }
0x1977   :  { %v4581_v30 = vpop.eup %4580 }
0x1978   :  { %v3207_v27 = vsel %vm217_vm2, %v4581_v30, 0.0  ;;  %v3374_v49 = vpop.permute.xlu1 %3373 }
0x1979   :  { %3208 = vadd.xlane.f32.xlu0 %v3207_v27  ;;  %v3394_v57 = vsel %vm217_vm2, %v5258_v62, %v3374_v49  ;;  %v3989_v27 = vld [vmem:[%s5472_s9 + $0x68] sm:$0xff]  ;;  %v3981_v49 = vld [vmem:[#allocation10 + $0x1] ss:$0 sm:$0xff] }
0x197b   :  { %v4583_v31 = vpop.eup %4582 }
0x197c   :  { %v3210_v32 = vsel %vm217_vm2, %v4583_v31, 0.0  ;;  %v3382_v54 = vpop.permute.xlu1 %3381 }
0x197d   :  { %3211 = vadd.xlane.f32.xlu0 %v3210_v32  ;;  %v3396_v58 = vsel %vm1567_vm4, %v3394_v57, %v3382_v54  ;;  %v3993_v57 = vld [vmem:[%s5473_s10 + $0x1] ss:$0 sm:$0xff] }
0x1993   :  { %3293 = vrot.lane.b32.xlu0 %v5202_v26, %s4757_s0  ;;  %v3968_v26 = vld [vmem:[%s5466_s3 + $0x20] sm:$0xff] }
0x1994   :  { %v4452_v41 = vpack.c.bf16 %v3969_v40, %v3968_v26  ;;  %v3976_v40 = vld [vmem:[#allocation8 + $0x1] ss:$0 sm:$0xff] }
0x1996   :  { %4453 = vmatprep.subr.bf16.mxu0 %v4452_v41 }
0x1997   :  { %3379 = vrot.lane.b32.xlu0 %v2957_v6, %s5489_s30 }
0x1a06   :  { %v3209_v33 = vpop.xlane.xlu0 %3208 }
0x1a07   :  { %4584 = vrcp.f32 %v3209_v33 }
0x1a0a   :  { %v3212_v34 = vpop.xlane.xlu0 %3211 }
0x1a0b   :  { %4586 = vrcp.f32 %v3212_v34 }
0x1a0e   :  { %v3294_v35 = vpop.permute.xlu0 %3293 }
0x1a0f   :  { %4348 = vmatpush3.msra.mxu1 %v3294_v35 }
0x1a11   :  { %v4585_v36 = vpop.eup %4584 }
0x1a12   :  { %v3215_v37 = vmul.f32 %v4585_v36, %v4581_v30  ;;  %v3380_v51 = vpop.permute.xlu0 %3379  ;;  %v3988_v30 = vld [vmem:[%s5472_s9 + $0x60] sm:$0xff] }
0x1a13   :  { %v3395_v55 = vsel %vm1567_vm4, %v3393_v53, %v3380_v51 }
0x1a14   :  { %4345 = vmatmul.mubr.msk.f32.vlgmr.msra.gmra.mrb[30].mxu0 %vm217_vm2, %v3215_v37 }
0x1a15   :  { %v4587_v38 = vpop.eup %4586  ;;  %4455 = vmatpush3.bf16.msra.mxu0 %v4452_v41 }
0x1a16   :  { %v3216_v39 = vmul.f32 %v4587_v38, %v4583_v31  ;;  %4457 = vmatprep.subr.bf16.mxu0 %v4456_v44  ;;  %v4476_v31 = vpack.c.bf16 %v3989_v27, %v3988_v30  ;;  %v3999_v27 = vld [vmem:[%s5475_s12 + $0x1] ss:$0 sm:$0xff] }
0x1a18   :  { %4350 = vmatmul.mubr.msk.f32.vlgmr.msra.gmra.mrb[40].mxu1 %vm217_vm2, %v3216_v39  ;;  %v3975_v39 = vld [vmem:[#allocation7 + $0x1] ss:$0 sm:$0xff] }
0x1a19   :  { %4459 = vmatpush3.bf16.msra.mxu0 %v4456_v44 }
0x1a1a   :  { %4469 = vmatprep.subr.bf16.mxu0 %v4468_v13 }
0x1ae7   :  { %v3289_v45 = vpop.f32.mrb[30].mxu0 }
0x1ae8   :  { %3387 = vrot.lane.b32.xlu0 %v3289_v45, %s5490_s25  ;;  %v4346_v46 = vpop.f32.mrb[31].mxu0 }
0x1aeb   :  { %v3365_v47 = vpop.f32.mrb[40].mxu1 }
0x1aec   :  { %3389 = vrot.lane.b32.xlu1 %v3365_v47, %s5490_s25  ;;  %v4351_v50 = vpop.f32.mrb[41].mxu1  ;;  %v3990_v47 = vld [vmem:[%s5472_s9 + $0x70] sm:$0xff] }
0x1aed   :  { %v3991_v50 = vld [vmem:[%s5472_s9 + $0x78] sm:$0xff] }
0x1aee   :  { %v4480_v48 = vpack.c.bf16 %v3991_v50, %v3990_v47 }
0x1b5a   :  { %v3388_v56 = vpop.permute.xlu0 %3387 }
0x1b5b   :  { %v3397_v52 = vsel %vm1570_vm3, %v3395_v55, %v3388_v56 }
0x1b5c   :  { %4360 = vmatprep.mubr.msk.f32.mxu0 %vm132_vm0, %v3397_v52 }
0x1b5e   :  { %v3390_v59 = vpop.permute.xlu1 %3389 }
0x1b5f   :  { %v3398_v61 = vsel %vm1570_vm3, %v3396_v58, %v3390_v59 }
0x1b60   :  { %4361 = vmatmul.mubr.msk.f32.vlgmr.msra.gmra.mrb[32].mxu0 %vm132_vm0, %v3398_v61 }
0x1b61   :  { %4471 = vmatpush3.bf16.msra.mxu0 %v4468_v13  ;;  %v3998_v13 = vld [vmem:[%s5474_s11 + $0x1] ss:$0 sm:$0xff]  ;;  %s4759_s11 = smov [#allocation11]  }
0x1b62   :  { %4473 = vmatprep.subr.bf16.mxu0 %v4472_v29  ;;  %s3882_s30 = sshll.u32 %s4759_s11, 4  ;;  %s3883_s30 = int_to_ptr.vmem [resolvable:$true] %s3882_s30 }
0x1b63   :  { %s4706_s12 = scalar_lea.vmem %s3883_s30, 256  ;;  %p4711_p13 = scmp.lt.s32.totalorder %s3883_s30, %s3883_s30 }
0x1b64   :  { %p4707_p12 = scmp.ne.s32.totalorder %s3883_s30, %s4706_s12  ;;  %p4712_p0 = scmp.lt.s32.totalorder %s4706_s12, %s4706_s12 }
0x1b65   :  { %4475 = vmatpush3.bf16.msra.mxu0 %v4472_v29 }
0x1b66   :  { %4477 = vmatprep.subr.bf16.mxu0 %v4476_v31  ;;  %p4713_p1 = por %p4712_p0, %p4711_p13 }
0x1b68   :  { %p4714_p2 = pnand %p4713_p1, %p4707_p12 }
0x1b69   :  { %4479 = vmatpush3.bf16.msra.mxu0 %v4476_v31 }
0x1b6a   :  { %4481 = vmatprep.subr.bf16.mxu0 %v4480_v48 }
0x1b6d   :  { %4483 = vmatpush3.bf16.msra.mxu0 %v4480_v48 }
0x1c33   :  { %v4362_v60 = vpop.f32.mrb[32].mxu0 }
0x1c34   :  { %v3490_v0 = vadd.f32 %v4362_v60, %v3972_v63  ;;  %v3484_v1 = vpop.f32.mrb[33].mxu0 }
0x1c35   :  { %v3485_v7 = vadd.f32 %v3972_v63, %v3484_v1 }
0x1c36   :  { %v3494_v5 = vadd.f32 %v3490_v0, %v5191_v23 }
0x1c37   :  { %v3493_v2 = vadd.f32 %v3485_v7, %v5189_v22  ;;  %v3977_v22 = vld [vmem:[%s5470_s7 + $0x20] sm:$0xff] }
0x1c38   :  { %v3502_v3 = vsel %vm132_vm0, %v3494_v5, 0.0  ;;  %v4460_v12 = vpack.c.bf16 %v3978_v18, %v3977_v22  ;;  %v3786_v22 = vld [vmem:[%s5476_s13 + $0x18] sm:$0xff] }
0x1c39   :  { %3503 = vadd.xlane.f32.xlu1 %v3502_v3  ;;  %v3499_v62 = vsel %vm132_vm0, %v3493_v2, 0.0 }
0x1c3a   :  { %3500 = vadd.xlane.f32.xlu0 %v3499_v62  ;;  %4461 = vmatprep.subr.bf16.mxu1 %v4460_v12 }
0x1c3b   :  { %4463 = vmatpush3.bf16.msra.mxu1 %v4460_v12 }
0x1c3c   :  { %4465 = vmatprep.subr.bf16.mxu1 %v4464_v8 }
0x1c3f   :  { %4467 = vmatpush3.bf16.msra.mxu1 %v4464_v8 }
0x1cc6   :  { %v3504_v4 = vpop.xlane.xlu1 %3503 }
0x1cc7   :  { %v3506_v6 = vmul.f32 0.03125, %v3504_v4  ;;  %v3501_v9 = vpop.xlane.xlu0 %3500 }
0x1cc8   :  { %v3505_v10 = vmul.f32 0.03125, %v3501_v9 }
0x1cc9   :  { %v3508_v11 = vsub.f32 %v3494_v5, %v3506_v6 }
0x1cca   :  { %v3507_v14 = vsub.f32 %v3493_v2, %v3505_v10 }
0x1ccb   :  { %v3510_v17 = vmul.f32 %v3508_v11, %v3508_v11 }
0x1ccc   :  { %v3509_v15 = vmul.f32 %v3507_v14, %v3507_v14 }
0x1ccd   :  { %v3514_v23 = vsel %vm132_vm0, %v3510_v17, 0.0 }
0x1cce   :  { %v3511_v16 = vsel %vm132_vm0, %v3509_v15, 0.0  ;;  %v3783_v15 = vld [vmem:[%s5476_s13] sm:$0xff] }
0x1ccf   :  { %3512 = vadd.xlane.f32.xlu0 %v3511_v16  ;;  %v3784_v16 = vld [vmem:[%s5476_s13 + $0x8] sm:$0xff] }
0x1cd0   :  { %v4484_v17 = vpack.c.bf16 %v3784_v16, %v3783_v15 }
0x1cd2   :  { %4485 = vmatprep.subr.bf16.mxu1 %v4484_v17 }
0x1cd3   :  { %3515 = vadd.xlane.f32.xlu0 %v3514_v23  ;;  %v3785_v23 = vld [vmem:[%s5476_s13 + $0x10] sm:$0xff] }
0x1cd4   :  { %v4488_v18 = vpack.c.bf16 %v3786_v22, %v3785_v23 }
0x1d5c   :  { %v3513_v32 = vpop.xlane.xlu0 %3512 }
0x1d5d   :  { %v3517_v33 = vmul.f32 0.03125, %v3513_v32 }
0x1d5f   :  { %v3519_v34 = vadd.f32 1e-05, %v3517_v33 }
0x1d60   :  { %v3516_v35 = vpop.xlane.xlu0 %3515 }
0x1d61   :  { %4588 = vrsqrt.f32 %v3519_v34  ;;  %v3518_v36 = vmul.f32 0.03125, %v3516_v35  ;;  %v4000_v35 = vld [vmem:[%s5477_s14] ss:$0 sm:$0xff] }
0x1d63   :  { %v3520_v37 = vadd.f32 1e-05, %v3518_v36 }
0x1d65   :  { %4590 = vrsqrt.f32 %v3520_v37 }
0x1d6b   :  { %v4589_v38 = vpop.eup %4588 }
0x1d6c   :  { %v3523_v26 = vmul.f32 %v4589_v38, %v3507_v14 }
0x1d6e   :  { %v3531_v41 = vmul.f32 %v3975_v39, %v3523_v26 }
0x1d6f   :  { %v4591_v42 = vpop.eup %4590 }
0x1d70   :  { %v3524_v43 = vmul.f32 %v4591_v42, %v3508_v11  ;;  %v3539_v44 = vadd.f32 %v3976_v40, %v3531_v41 }
0x1d72   :  { %v3532_v45 = vmul.f32 %v3975_v39, %v3524_v43  ;;  %4371 = vmatprep.mubr.msk.f32.mxu1 %vm132_vm0, %v3539_v44 }
0x1d74   :  { %v3540_v46 = vadd.f32 %v3976_v40, %v3532_v45 }
0x1d76   :  { %4372 = vmatmul.mubr.msk.f32.vlgmr.msra.gmra.mrb[42].mxu1 %vm132_vm0, %v3540_v46 }
0x1d77   :  { %4487 = vmatpush3.bf16.msra.mxu1 %v4484_v17 }
0x1d78   :  { %4489 = vmatprep.subr.bf16.mxu1 %v4488_v18 }
0x1d7b   :  { %4491 = vmatpush3.bf16.msra.mxu1 %v4488_v18 }
0x1e49   :  { %v4373_v51 = vpop.f32.mrb[42].mxu1 }
0x1e4a   :  { %v3632_v53 = vadd.f32 %v4373_v51, %v3981_v49  ;;  %v3626_v54 = vpop.f32.mrb[43].mxu1 }
0x1e4b   :  { %v3627_v55 = vadd.f32 %v3981_v49, %v3626_v54 }
0x1e4c   :  { %v3636_v52 = vmax.f32 %v3632_v53, 0.0 }
0x1e4d   :  { %v3635_v56 = vmax.f32 %v3627_v55, 0.0 }
0x1e4f   :  { %4390 = vmatprep.mubr.msk.f32.mxu0 %vm1821_vm5, %v3635_v56 }
0x1e50   :  { %4391 = vmatmul.mubr.msk.f32.vlgmr.msra.gmra.mrb[34].mxu0 %vm1821_vm5, %v3636_v52 }
0x1f23   :  { %v4392_v58 = vpop.f32.mrb[34].mxu0 }
0x1f24   :  { %v3732_v59 = vadd.f32 %v4392_v58, %v3993_v57  ;;  %v3726_v61 = vpop.f32.mrb[35].mxu0 }
0x1f25   :  { %v3727_v63 = vadd.f32 %v3993_v57, %v3726_v61 }
0x1f26   :  { %v3736_v60 = vadd.f32 %v3732_v59, %v3540_v46 }
0x1f27   :  { %v3735_v0 = vadd.f32 %v3727_v63, %v3539_v44 }
0x1f28   :  { %v3744_v1 = vsel %vm132_vm0, %v3736_v60, 0.0 }
0x1f29   :  { %3745 = vadd.xlane.f32.xlu0 %v3744_v1  ;;  %v3741_v7 = vsel %vm132_vm0, %v3735_v0, 0.0 }
0x1f2a   :  { %3742 = vadd.xlane.f32.xlu1 %v3741_v7 }
0x1fb6   :  { %v3746_v5 = vpop.xlane.xlu0 %3745 }
0x1fb7   :  { %v3748_v2 = vmul.f32 0.03125, %v3746_v5  ;;  %v3743_v3 = vpop.xlane.xlu1 %3742 }
0x1fb8   :  { %v3747_v62 = vmul.f32 0.03125, %v3743_v3 }
0x1fb9   :  { %v3750_v4 = vsub.f32 %v3736_v60, %v3748_v2 }
0x1fba   :  { %v3749_v6 = vsub.f32 %v3735_v0, %v3747_v62 }
0x1fbb   :  { %v3752_v9 = vmul.f32 %v3750_v4, %v3750_v4 }
0x1fbc   :  { %v3751_v10 = vmul.f32 %v3749_v6, %v3749_v6 }
0x1fbd   :  { %v3756_v11 = vsel %vm132_vm0, %v3752_v9, 0.0 }
0x1fbe   :  { %3757 = vadd.xlane.f32.xlu0 %v3756_v11  ;;  %v3753_v14 = vsel %vm132_vm0, %v3751_v10, 0.0 }
0x1fbf   :  { %3754 = vadd.xlane.f32.xlu1 %v3753_v14 }
0x204b   :  { %v3758_v12 = vpop.xlane.xlu0 %3757 }
0x204c   :  { %v3760_v19 = vmul.f32 0.03125, %v3758_v12  ;;  %v3755_v20 = vpop.xlane.xlu1 %3754 }
0x204d   :  { %v3759_v8 = vmul.f32 0.03125, %v3755_v20 }
0x204e   :  { %v3762_v21 = vadd.f32 1e-05, %v3760_v19 }
0x204f   :  { %v3761_v24 = vadd.f32 1e-05, %v3759_v8 }
0x2050   :  { %4592 = vrsqrt.f32 %v3762_v21 }
0x2051   :  { %4594 = vrsqrt.f32 %v3761_v24 }
0x205a   :  { %v4593_v25 = vpop.eup %4592 }
0x205b   :  { %v4595_v28 = vpop.eup %4594  ;;  %v3766_v29 = vmul.f32 %v4593_v25, %v3750_v4 }
0x205c   :  { %v3765_v30 = vmul.f32 %v4595_v28, %v3749_v6 }
0x205d   :  { %v3774_v31 = vmul.f32 %v3998_v13, %v3766_v29 }
0x205e   :  { %v3773_v32 = vmul.f32 %v3998_v13, %v3765_v30 }
0x205f   :  { %v3782_v34 = vadd.f32 %v3999_v27, %v3774_v31 }
0x2060   :  { %v3781_v33 = vadd.f32 %v3999_v27, %v3773_v32 }
0x2062   :  { %4401 = vmatprep.mubr.msk.f32.mxu1 %vm132_vm0, %v3781_v33 }
0x2063   :  { %4402 = vmatmul.mubr.msk.f32.vlgmr.msra.gmra.mrb[44].mxu1 %vm132_vm0, %v3782_v34 }
0x2136   :  { %v4403_v36 = vpop.f32.mrb[44].mxu1 }
0x2137   :  { %v3872_v37 = vadd.f32 %v4403_v36, %v4000_v35  ;;  %v3866_v38 = vpop.f32.mrb[45].mxu1 }
0x2138   :  { %v3867_v39 = vadd.f32 %v4000_v35, %v3866_v38 }
0x2139   :  { %3876 = vst [vmem:[#allocation11 + $0x8] sm:$0xff] %v3872_v37 }
0x213a   :  { %3875 = vst [vmem:[#allocation11] sm:$0xff] %v3867_v39 }
0x213b   :  { %4717 = shalt.err (!%p4714_p2)
}
0x213c   :  { %s5491_s7 = sld [smem:[#allocation16_spill]] }
0x2142   :  { %s4718_s14 = scalar_lea.hbm %s5491_s7, 256 }
0x2143   :  { %p4719_p3 = scmp.ne.s32.totalorder %s5491_s7, %s4718_s14  ;;  %p4722_p4 = scmp.lt.u32.totalorder %s4718_s14, %s5491_s7 }
0x2145   :  { %p4724_p5 = pnand %p4722_p4, %p4719_p3 }
0x2147   :  { %4727 = shalt.err (!%p4724_p5)
}
0x2148   :  { %s5492_s19 = smov 128  }
0x2149   :  { %3888 = dma.vmem_to_hbm [thread:$0]  %s3883_s30, 256, %s5491_s7, [#allocation4], %s5492_s19, %s5492_s19, %s5488_s2  }
0x214a   :  { %4734 = dma.done.wait [#allocation4], 256  }
0x214b   :  { %4735 = vsyncadd [#allocation4], 4294967040 }
0x214c   :  { %3892 = vsyncpa [#allocation3], 1 }
0x214d   :  { %3893 = vsyncpa [#allocation6], 1 }
0x214e   :  { %3894 = vsyncpa [#allocation9], 1 }
0x214f   :  { %3895 = vsyncpa [#allocation4], 1 }

</bundles_post_ra>
